<compile_context>
chip_gen: v5e
topology: v5e:2x2
jax: 0.10.0
libtpu: 0.0.40
codegen_flags: <defaults>
</compile_context>

<pallas_src>
import functools

import jax
import jax.numpy as jnp
from jax import lax
from jax.experimental import pallas as pl
from jax.experimental.pallas import tpu as pltpu


_VMEM_LIMIT = 64 * 1024 * 1024   # explicit scoped-VMEM limit (<= physical on v5e/v6e/v7x)


# ----------------------------------------------------------------------------
# Kernel 1: 1x1 conv (row-tiled matmul) + folded BatchNorm + SiLU
# ----------------------------------------------------------------------------
def _cbs_matmul_kernel(x_ref, w_ref, scale_ref, bias_ref, o_ref):
    # x: (TM, Cin) f32 ; w: (Cin, Cout) bf16 ; scale/bias: (1, Cout) f32
    a = x_ref[...].astype(jnp.bfloat16)               # bf16 MXU operands
    y = jnp.dot(a, w_ref[...], preferred_element_type=jnp.float32)
    y = y * scale_ref[...] + bias_ref[...]            # folded BN (f32)
    o_ref[...] = (y * jax.nn.sigmoid(y)).astype(o_ref.dtype)      # SiLU


def _pick_row_tile(M, target):
    """Largest MXU/sublane-friendly row tile <= target that divides M.

    Avoids the jnp.pad remainder pass (a full extra HBM read+write) for the
    common case; padding is kept only as a fallback for pathological M.
    """
    target = min(target, M)
    for align in (256, 128, 8):
        t = (target // align) * align
        while t >= align:
            if M % t == 0:
                return t, 0
            t -= align
    t = ((min(M, max(target, 8)) + 7) // 8) * 8
    return t, (-M) % t


def cbs_1x1(x_flat, w, scale, bias, *, target_tm=512, out_dtype=jnp.bfloat16):
    """x_flat: (M, Cin) f32; w: (Cin, Cout); scale/bias: (Cout,)."""
    M, Cin = x_flat.shape
    Cout = w.shape[1]

    tm, pad = _pick_row_tile(M, target_tm)
    if pad:  # rare fallback only
        x_flat = jnp.pad(x_flat, ((0, pad), (0, 0)))
    Mp = M + pad

    w_bf = w.astype(jnp.bfloat16)
    scale2 = scale.reshape(1, Cout).astype(jnp.float32)
    bias2 = bias.reshape(1, Cout).astype(jnp.float32)

    out = pl.pallas_call(
        _cbs_matmul_kernel,
        out_shape=jax.ShapeDtypeStruct((Mp, Cout), out_dtype),
        grid=(Mp // tm,),
        in_specs=[
            pl.BlockSpec((tm, Cin), lambda i: (i, 0)),      # activation tiles
            pl.BlockSpec((Cin, Cout), lambda i: (0, 0)),    # weights resident
            pl.BlockSpec((1, Cout), lambda i: (0, 0)),
            pl.BlockSpec((1, Cout), lambda i: (0, 0)),
        ],
        out_specs=pl.BlockSpec((tm, Cout), lambda i: (i, 0)),
        compiler_params=pltpu.CompilerParams(
            dimension_semantics=("parallel",),
            vmem_limit_bytes=_VMEM_LIMIT),
    )(x_flat, w_bf, scale2, bias2)
    return out[:M] if pad else out


# ----------------------------------------------------------------------------
# Kernel 2: fused SPPF tail: 3 chained max-pools (k, stride 1, pad k//2),
# implicit channel concat, conv2 (1x1) + folded BN + SiLU.  NHWC layout so the
# channels are lane-dense; pooling shifts hit the sublane / leading dims only.
# ----------------------------------------------------------------------------
def _sppf_tail_kernel(x_ref, w2_ref, scale_ref, bias_ref, o_ref, pad_ref, *, k):
    # x_ref : (1, H, W, C) bf16     w2_ref: (4, C, Cout) bf16
    # o_ref : (1, H*W, Cout) f32    pad_ref: (H+2p, W+2p, C) f32 VMEM scratch
    p = k // 2
    H, W, C = x_ref.shape[1], x_ref.shape[2], x_ref.shape[3]
    neg = jnp.float32(-jnp.inf)

    # -inf borders of the single merged pooling scratch.  Rewritten every image
    # (thin strips, negligible vst work) because the scratch is per-core and a
    # one-time pl.when(program_id==0) init is unsafe under megacore splitting.
    pad_ref[0:p, :, :] = jnp.full((p, W + 2 * p, C), neg, jnp.float32)
    pad_ref[p + H:p + H + p, :, :] = jnp.full((p, W + 2 * p, C), neg, jnp.float32)
    pad_ref[p:p + H, 0:p, :] = jnp.full((H, p, C), neg, jnp.float32)
    pad_ref[p:p + H, p + W:p + W + p, :] = jnp.full((H, p, C), neg, jnp.float32)

    def pool(a):  # (H, W, C) f32 -> (H, W, C) f32, separable k x k "same" max
        pad_ref[p:p + H, p:p + W, :] = a                # pool along W
        m = pad_ref[p:p + H, 0:W, :]
        for o in range(1, k):
            m = jnp.maximum(m, pad_ref[p:p + H, o:o + W, :])
        pad_ref[p:p + H, p:p + W, :] = m                # pool along H
        m2 = pad_ref[0:H, p:p + W, :]
        for o in range(1, k):
            m2 = jnp.maximum(m2, pad_ref[o:o + H, p:p + W, :])
        return m2

    x = x_ref[0].astype(jnp.float32)
    y1 = pool(x)
    y2 = pool(y1)
    y3 = pool(y2)

    # conv2 over the implicit concat [x, y1, y2, y3] along channels:
    # (H*W, 4C) @ (4C, Cout) computed as 4 partial bf16 matmuls, f32 accumulate
    hw = H * W

    def mm(a, blk):
        return jnp.dot(a.reshape(hw, C).astype(jnp.bfloat16), w2_ref[blk],
                       preferred_element_type=jnp.float32)

    acc = mm(x, 0) + mm(y1, 1) + mm(y2, 2) + mm(y3, 3)
    y = acc * scale_ref[...] + bias_ref[...]
    # flattened, lane-dense output block; reshaped to (N,H,W,Cout) outside
    o_ref[0] = (y * jax.nn.sigmoid(y)).astype(o_ref.dtype)


def sppf_tail(x1_nhwc, w2, scale2, bias2, k):
    """x1_nhwc: (N, H, W, C) bf16; w2: (4*C, Cout) -> (N, H*W, Cout) f32."""
    N, H, W, C = x1_nhwc.shape
    Cout = w2.shape[1]
    p = k // 2
    w2_blocked = w2.reshape(4, C, Cout).astype(jnp.bfloat16)
    scale_2d = scale2.reshape(1, Cout).astype(jnp.float32)
    bias_2d = bias2.reshape(1, Cout).astype(jnp.float32)

    return pl.pallas_call(
        functools.partial(_sppf_tail_kernel, k=k),
        out_shape=jax.ShapeDtypeStruct((N, H * W, Cout), jnp.float32),
        grid=(N,),
        in_specs=[
            pl.BlockSpec((1, H, W, C), lambda n: (n, 0, 0, 0)),
            pl.BlockSpec((4, C, Cout), lambda n: (0, 0, 0)),   # w2 resident
            pl.BlockSpec((1, Cout), lambda n: (0, 0)),
            pl.BlockSpec((1, Cout), lambda n: (0, 0)),
        ],
        out_specs=pl.BlockSpec((1, H * W, Cout), lambda n: (n, 0, 0)),
        scratch_shapes=[
            pltpu.VMEM((H + 2 * p, W + 2 * p, C), jnp.float32),  # merged pool pad
        ],
        compiler_params=pltpu.CompilerParams(
            dimension_semantics=("parallel",),
            vmem_limit_bytes=_VMEM_LIMIT),
    )(x1_nhwc, w2_blocked, scale_2d, bias_2d)


# ----------------------------------------------------------------------------
# SPPF forward (boundary layout conversion + BN folding in plain JAX)
# ----------------------------------------------------------------------------
def fold_bn(gamma, beta, mean, var, eps=1e-5):
    scale = gamma / jnp.sqrt(var + eps)
    bias = beta - mean * scale
    return scale, bias


def sppf_forward(x, w1, scale1, bias1, w2, scale2, bias2, k):
    # x: (N, Cin, H, W) float32
    assert k % 2 == 1, "SPPF 'same' max-pool requires odd kernel_size"
    N, Cin, H, W = x.shape
    c_ = w1.shape[1]
    Cout = w2.shape[1]

    # single boundary conversion NCHW -> NHWC (channels into lanes)
    x_flat = jnp.transpose(x, (0, 2, 3, 1)).reshape(N * H * W, Cin)
    # conv1 + BN + SiLU; x1 hand-off stored in bf16 (halves its HBM traffic)
    x1 = cbs_1x1(x_flat, w1, scale1, bias1,
                 out_dtype=jnp.bfloat16).reshape(N, H, W, c_)

    out_flat = sppf_tail(x1, w2, scale2, bias2, k)   # pools+concat+conv2 fused
    out_nhwc = out_flat.reshape(N, H, W, Cout)       # free metadata reshape

    return jnp.transpose(out_nhwc, (0, 3, 1, 2))     # back to NCHW


# ----------------------------------------------------------------------------
# Pure-JAX reference (eval-mode BN) for a sanity check
# ----------------------------------------------------------------------------
def _ref_cbs(x_nchw, w, gamma, beta, mean, var, eps=1e-5):
    y = jnp.einsum('nchw,co->nohw', x_nchw, w,
                   precision=lax.Precision.HIGHEST)
    y = (y - mean[None, :, None, None]) / jnp.sqrt(var + eps)[None, :, None, None]
    y = y * gamma[None, :, None, None] + beta[None, :, None, None]
    return y * jax.nn.sigmoid(y)


def _ref_pool(a, k):
    p = k // 2
    return lax.reduce_window(a, -jnp.inf, lax.max,
                             (1, 1, k, k), (1, 1, 1, 1),
                             [(0, 0), (0, 0), (p, p), (p, p)])


def ref_sppf(x, w1, bn1, w2, bn2, k):
    x1 = _ref_cbs(x, w1, *bn1)
    y1 = _ref_pool(x1, k)
    y2 = _ref_pool(y1, k)
    y3 = _ref_pool(y2, k)
    cat = jnp.concatenate([x1, y1, y2, y3], axis=1)
    return _ref_cbs(cat, w2, *bn2)


# ----------------------------------------------------------------------------
if __name__ == "__main__":
    N, Cin, H, W = 2, 4, 16, 16     # SPPF(in_channels=4, out_channels=8, k=5)
    Cout = 8
    K = 5
    c_ = Cin // 2

    key = jax.random.PRNGKey(0)
    ks = jax.random.split(key, 12)

    x = jax.random.normal(ks[0], (N, Cin, H, W), jnp.float32)

    # conv1: (c_, Cin, 1, 1) stored as (Cin, c_) matmul weight
    w1 = jax.random.normal(ks[1], (Cin, c_), jnp.float32) * 0.5
    g1 = 1.0 + 0.1 * jax.random.normal(ks[2], (c_,), jnp.float32)
    b1 = 0.1 * jax.random.normal(ks[3], (c_,), jnp.float32)
    m1 = 0.1 * jax.random.normal(ks[4], (c_,), jnp.float32)
    v1 = 1.0 + 0.1 * jnp.abs(jax.random.normal(ks[5], (c_,), jnp.float32))

    # conv2: (Cout, 4*c_, 1, 1) stored as (4*c_, Cout)
    w2 = jax.random.normal(ks[6], (4 * c_, Cout), jnp.float32) * 0.5
    g2 = 1.0 + 0.1 * jax.random.normal(ks[7], (Cout,), jnp.float32)
    b2 = 0.1 * jax.random.normal(ks[8], (Cout,), jnp.float32)
    m2 = 0.1 * jax.random.normal(ks[9], (Cout,), jnp.float32)
    v2 = 1.0 + 0.1 * jnp.abs(jax.random.normal(ks[10], (Cout,), jnp.float32))

    s1, bb1 = fold_bn(g1, b1, m1, v1)
    s2, bb2 = fold_bn(g2, b2, m2, v2)

    out = sppf_forward(x, w1, s1, bb1, w2, s2, bb2, K)
    out = jax.block_until_ready(out)
    assert out.shape == (N, Cout, H, W), out.shape

    ref = jax.block_until_ready(ref_sppf(x, w1, (g1, b1, m1, v1),
                                         w2, (g2, b2, m2, v2), K))
    # tolerance slightly loosened vs pure-f32: bf16 MXU operands + bf16 x1 hand-off
    assert jnp.allclose(out, ref, rtol=2e-2, atol=2e-2), \
        float(jnp.max(jnp.abs(out - ref)))

    print("KERNEL_OK")
</pallas_src>

<mosaic_0001>
module attributes {stable_mosaic.version = 11 : i64} {
  func.func @_cbs_matmul_kernel(%arg0: i32, %arg1: memref<512x4xf32, #tpu.memory_space<vmem>>, %arg2: memref<4x2xbf16, #tpu.memory_space<vmem>>, %arg3: memref<1x2xf32, #tpu.memory_space<vmem>>, %arg4: memref<1x2xf32, #tpu.memory_space<vmem>>, %arg5: memref<512x2xbf16, #tpu.memory_space<vmem>>) attributes {dimension_semantics = [#tpu.dimension_semantics<parallel>], iteration_bounds = array<i64: 1>, scalar_prefetch = 0 : i64, scratch_operands = 0 : i64, tpu.core_type = #tpu.core_type<tc>, window_params = [{transform_indices = @transform_0, window_bounds = array<i64: 512, 4>}, {pipeline_mode = #tpu.pipeline_mode<synchronous>, transform_indices = @transform_1, window_bounds = array<i64: 4, 2>}, {pipeline_mode = #tpu.pipeline_mode<synchronous>, transform_indices = @transform_2, window_bounds = array<i64: 1, 2>}, {pipeline_mode = #tpu.pipeline_mode<synchronous>, transform_indices = @transform_3, window_bounds = array<i64: 1, 2>}, {transform_indices = @transform_4, window_bounds = array<i64: 512, 2>}]} {
    %c0 = arith.constant 0 : index
    %c0_0 = arith.constant 0 : index
    %0 = vector.load %arg1[%c0, %c0_0] : memref<512x4xf32, #tpu.memory_space<vmem>>, vector<512x4xf32>
    %1 = arith.truncf %0 : vector<512x4xf32> to vector<512x4xbf16>
    %c0_1 = arith.constant 0 : index
    %c0_2 = arith.constant 0 : index
    %2 = vector.load %arg2[%c0_1, %c0_2] : memref<4x2xbf16, #tpu.memory_space<vmem>>, vector<4x2xbf16>
    %cst = arith.constant dense<0.000000e+00> : vector<512x2xf32>
    %3 = tpu.matmul %1, %2, %cst {dimension_numbers = #tpu.dot_dimension_numbers<[1], [0], [0], [1], [0, 0, 1, 1], [], []>} : vector<512x4xbf16>, vector<4x2xbf16>, vector<512x2xf32> -> vector<512x2xf32>
    %c0_3 = arith.constant 0 : index
    %c0_4 = arith.constant 0 : index
    %4 = vector.load %arg3[%c0_3, %c0_4] : memref<1x2xf32, #tpu.memory_space<vmem>>, vector<1x2xf32>
    %5 = vector.broadcast %4 : vector<1x2xf32> to vector<512x2xf32>
    %6 = arith.mulf %3, %5 : vector<512x2xf32>
    %c0_5 = arith.constant 0 : index
    %c0_6 = arith.constant 0 : index
    %7 = vector.load %arg4[%c0_5, %c0_6] : memref<1x2xf32, #tpu.memory_space<vmem>>, vector<1x2xf32>
    %8 = vector.broadcast %7 : vector<1x2xf32> to vector<512x2xf32>
    %9 = arith.addf %6, %8 : vector<512x2xf32>
    %10 = arith.negf %9 : vector<512x2xf32>
    %11 = math.exp %10 : vector<512x2xf32>
    %cst_7 = arith.constant 1.000000e+00 : f32
    %12 = vector.broadcast %cst_7 : f32 to vector<512x2xf32>
    %13 = arith.addf %12, %11 : vector<512x2xf32>
    %14 = arith.divf %12, %13 : vector<512x2xf32>
    %15 = arith.mulf %9, %14 : vector<512x2xf32>
    %16 = arith.truncf %15 : vector<512x2xf32> to vector<512x2xbf16>
    %c0_8 = arith.constant 0 : index
    %c0_9 = arith.constant 0 : index
    %17 = vector.load %arg5[%c0_8, %c0_9] : memref<512x2xbf16, #tpu.memory_space<vmem>>, vector<512x2xbf16>
    tpu.vector_store %arg5[%c0_8, %c0_9], %16 {strides = array<i32>} : memref<512x2xbf16, #tpu.memory_space<vmem>>, vector<512x2xbf16>,
    return
  }
  func.func @transform_0(%arg0: i32) -> (i32, i32) {
    %c0_i32 = arith.constant 0 : i32
    %c0_i32_0 = arith.constant 0 : i32
    return %arg0, %c0_i32 : i32, i32
  }
  func.func @transform_1(%arg0: i32) -> (i32, i32) {
    %c0_i32 = arith.constant 0 : i32
    %c0_i32_0 = arith.constant 0 : i32
    %c0_i32_1 = arith.constant 0 : i32
    return %c0_i32, %c0_i32_0 : i32, i32
  }
  func.func @transform_2(%arg0: i32) -> (i32, i32) {
    %c0_i32 = arith.constant 0 : i32
    %c0_i32_0 = arith.constant 0 : i32
    %c0_i32_1 = arith.constant 0 : i32
    return %c0_i32, %c0_i32_0 : i32, i32
  }
  func.func @transform_3(%arg0: i32) -> (i32, i32) {
    %c0_i32 = arith.constant 0 : i32
    %c0_i32_0 = arith.constant 0 : i32
    %c0_i32_1 = arith.constant 0 : i32
    return %c0_i32, %c0_i32_0 : i32, i32
  }
  func.func @transform_4(%arg0: i32) -> (i32, i32) {
    %c0_i32 = arith.constant 0 : i32
    %c0_i32_0 = arith.constant 0 : i32
    return %arg0, %c0_i32 : i32, i32
  }
}

</mosaic_0001>

<bundles_post_ra>
// kernel: tpu_custom_call.1
= control target key start
LH: loop header
LB: loop body
LE: loop exit
PB: predicated region body
PF: predicated region fallthrough
CT: control target
= control target key end

     0   :  { %vm212_vm0 = vcmask 1041408   ;;  %vm115_vm1 = vcmask 31744   ;;  %vm1865_vm7 = vcmask 11264   ;;  %s4148_s1 = inlined_call_operand.vmem [shape: bf16[4,2], index: 1, kind: input, shape index: {}]   ;;  %s4149_s0 = inlined_call_operand.vmem [shape: f32[512,4], index: 0, kind: input, shape index: {}]   ;;  %s4150_s2 = inlined_call_operand.vmem [shape: f32[1,2], index: 2, kind: input, shape index: {}]   ;;  %s4151_s3 = inlined_call_operand.vmem [shape: f32[1,2], index: 3, kind: input, shape index: {}]   ;;  %s4152_s4 = inlined_call_operand.vmem [shape: bf16[512,2], index: 4, kind: output, shape index: {}]  }
   0x1   :  { %v114_v0 = vld [vmem:[%s4148_s1] sm:$0x3]  ;;  %v19_v2 = vld [vmem:[%s4149_s0 + $0x8] sm:$0xff]  ;;  %v20_v14 = vld [vmem:[%s4149_s0 + $0x10] sm:$0xff] }
   0x2   :  { %v18_v1 = vld [vmem:[%s4149_s0] sm:$0xff]  ;;  %v214_v3 = vsel %vm212_vm0, %v114_v0, 0  ;;  %v35_v6 = vld [vmem:[%s4149_s0 + $0x88] sm:$0xff]  ;;  %v21_v15 = vld [vmem:[%s4149_s0 + $0x18] sm:$0xff] }
   0x3   :  { %v82_v4 = vpack.c.bf16 %v19_v2, %v18_v1  ;;  %v34_v5 = vld [vmem:[%s4149_s0 + $0x80] sm:$0xff]  ;;  %223 = vmatpush.bf16.msra.mxu0 %v214_v3  ;;  %2030 = vmatpush.bf16.msra.mxu1 %v214_v3  ;;  %v51_v9 = vld [vmem:[%s4149_s0 + $0x108] sm:$0xff]  ;;  %v36_v16 = vld [vmem:[%s4149_s0 + $0x90] sm:$0xff]  ;;  %v83_v22 = vpack.c.bf16 %v21_v15, %v20_v14 }
   0x4   :  { %v50_v7 = vld [vmem:[%s4149_s0 + $0x100] sm:$0xff]  ;;  %v90_v8 = vpack.c.bf16 %v35_v6, %v34_v5  ;;  %v67_v11 = vld [vmem:[%s4149_s0 + $0x188] sm:$0xff]  ;;  %2031 = vmatpush.bf16.msra.mxu2 %v214_v3  ;;  %2032 = vmatpush.bf16.msra.mxu3 %v214_v3  ;;  %v37_v17 = vld [vmem:[%s4149_s0 + $0x98] sm:$0xff] }
   0x5   :  { %v66_v10 = vld [vmem:[%s4149_s0 + $0x180] sm:$0xff]  ;;  %v98_v12 = vpack.c.bf16 %v51_v9, %v50_v7  ;;  %v52_v18 = vld [vmem:[%s4149_s0 + $0x110] sm:$0xff]  ;;  %v53_v19 = vld [vmem:[%s4149_s0 + $0x118] sm:$0xff]  ;;  %v91_v23 = vpack.c.bf16 %v37_v17, %v36_v16 }
   0x6   :  { %v106_v13 = vpack.c.bf16 %v67_v11, %v66_v10  ;;  %1934 = vmatmul.msk.bf16.vlgmr.msra.gmra.mxu0 %vm115_vm1, %v82_v4  ;;  %1942 = vmatmul.msk.bf16.vlgmr.msra.gmra.mxu1 %vm115_vm1, %v90_v8  ;;  %v68_v20 = vld [vmem:[%s4149_s0 + $0x190] sm:$0xff]  ;;  %v69_v21 = vld [vmem:[%s4149_s0 + $0x198] sm:$0xff]  ;;  %v99_v24 = vpack.c.bf16 %v53_v19, %v52_v18  ;;  %v22_v26 = vld [vmem:[%s4149_s0 + $0x20] sm:$0xff] }
   0x7   :  { %1950 = vmatmul.msk.bf16.vlgmr.msra.gmra.mxu2 %vm115_vm1, %v98_v12  ;;  %v107_v25 = vpack.c.bf16 %v69_v21, %v68_v20  ;;  %v23_v27 = vld [vmem:[%s4149_s0 + $0x28] sm:$0xff]  ;;  %v38_v28 = vld [vmem:[%s4149_s0 + $0xa0] sm:$0xff]  ;;  %v24_v38 = vld [vmem:[%s4149_s0 + $0x30] sm:$0xff] }
   0x8   :  { %1958 = vmatmul.msk.bf16.vlgmr.msra.gmra.mxu3 %vm115_vm1, %v106_v13  ;;  %v39_v29 = vld [vmem:[%s4149_s0 + $0xa8] sm:$0xff]  ;;  %v54_v30 = vld [vmem:[%s4149_s0 + $0x120] sm:$0xff]  ;;  %v84_v34 = vpack.c.bf16 %v23_v27, %v22_v26  ;;  %v25_v39 = vld [vmem:[%s4149_s0 + $0x38] sm:$0xff] }
   0x9   :  { %v55_v31 = vld [vmem:[%s4149_s0 + $0x128] sm:$0xff]  ;;  %v70_v32 = vld [vmem:[%s4149_s0 + $0x1a0] sm:$0xff]  ;;  %v92_v35 = vpack.c.bf16 %v39_v29, %v38_v28  ;;  %v40_v40 = vld [vmem:[%s4149_s0 + $0xb0] sm:$0xff]  ;;  %v85_v46 = vpack.c.bf16 %v25_v39, %v24_v38 }
   0xa   :  { %v71_v33 = vld [vmem:[%s4149_s0 + $0x1a8] sm:$0xff]  ;;  %v100_v36 = vpack.c.bf16 %v55_v31, %v54_v30  ;;  %v41_v41 = vld [vmem:[%s4149_s0 + $0xb8] sm:$0xff]  ;;  %v56_v42 = vld [vmem:[%s4149_s0 + $0x130] sm:$0xff] }
   0xb   :  { %v108_v37 = vpack.c.bf16 %v71_v33, %v70_v32  ;;  %v57_v43 = vld [vmem:[%s4149_s0 + $0x138] sm:$0xff]  ;;  %v72_v44 = vld [vmem:[%s4149_s0 + $0x1b0] sm:$0xff]  ;;  %v93_v47 = vpack.c.bf16 %v41_v41, %v40_v40  ;;  %v26_v50 = vld [vmem:[%s4149_s0 + $0x40] sm:$0xff] }
   0xc   :  { %v73_v45 = vld [vmem:[%s4149_s0 + $0x1b8] sm:$0xff]  ;;  %v101_v48 = vpack.c.bf16 %v57_v43, %v56_v42  ;;  %v27_v51 = vld [vmem:[%s4149_s0 + $0x48] sm:$0xff]  ;;  %v42_v52 = vld [vmem:[%s4149_s0 + $0xc0] sm:$0xff] }
   0xd   :  { %v109_v49 = vpack.c.bf16 %v73_v45, %v72_v44  ;;  %v43_v53 = vld [vmem:[%s4149_s0 + $0xc8] sm:$0xff]  ;;  %v58_v54 = vld [vmem:[%s4149_s0 + $0x140] sm:$0xff]  ;;  %v86_v58 = vpack.c.bf16 %v27_v51, %v26_v50  ;;  %v28_v62 = vld [vmem:[%s4149_s0 + $0x50] sm:$0xff] }
   0xe   :  { %v59_v55 = vld [vmem:[%s4149_s0 + $0x148] sm:$0xff]  ;;  %v74_v56 = vld [vmem:[%s4149_s0 + $0x1c0] sm:$0xff]  ;;  %v94_v59 = vpack.c.bf16 %v43_v53, %v42_v52  ;;  %v29_v63 = vld [vmem:[%s4149_s0 + $0x58] sm:$0xff] }
   0xf   :  { %v75_v57 = vld [vmem:[%s4149_s0 + $0x1c8] sm:$0xff]  ;;  %v102_v60 = vpack.c.bf16 %v59_v55, %v58_v54  ;;  %v44_v0 = vld [vmem:[%s4149_s0 + $0xd0] sm:$0xff]  ;;  %v45_v1 = vld [vmem:[%s4149_s0 + $0xd8] sm:$0xff]  ;;  %v87_v6 = vpack.c.bf16 %v29_v63, %v28_v62 }
  0x10   :  { %v110_v61 = vpack.c.bf16 %v75_v57, %v74_v56  ;;  %v60_v2 = vld [vmem:[%s4149_s0 + $0x150] sm:$0xff]  ;;  %v61_v3 = vld [vmem:[%s4149_s0 + $0x158] sm:$0xff]  ;;  %v95_v7 = vpack.c.bf16 %v45_v1, %v44_v0  ;;  %v30_v10 = vld [vmem:[%s4149_s0 + $0x60] sm:$0xff] }
  0x11   :  { %v76_v4 = vld [vmem:[%s4149_s0 + $0x1d0] sm:$0xff]  ;;  %v77_v5 = vld [vmem:[%s4149_s0 + $0x1d8] sm:$0xff]  ;;  %v103_v8 = vpack.c.bf16 %v61_v3, %v60_v2  ;;  %v31_v11 = vld [vmem:[%s4149_s0 + $0x68] sm:$0xff] }
  0x12   :  { %v111_v9 = vpack.c.bf16 %v77_v5, %v76_v4  ;;  %v46_v12 = vld [vmem:[%s4149_s0 + $0xe0] sm:$0xff]  ;;  %v47_v13 = vld [vmem:[%s4149_s0 + $0xe8] sm:$0xff]  ;;  %v88_v18 = vpack.c.bf16 %v31_v11, %v30_v10  ;;  %v64_v26 = vld [vmem:[%s4149_s0 + $0x170] sm:$0xff] }
  0x13   :  { %v62_v14 = vld [vmem:[%s4149_s0 + $0x160] sm:$0xff]  ;;  %v63_v15 = vld [vmem:[%s4149_s0 + $0x168] sm:$0xff]  ;;  %v96_v19 = vpack.c.bf16 %v47_v13, %v46_v12  ;;  %v65_v27 = vld [vmem:[%s4149_s0 + $0x178] sm:$0xff] }
  0x14   :  { %v78_v16 = vld [vmem:[%s4149_s0 + $0x1e0] sm:$0xff]  ;;  %v79_v17 = vld [vmem:[%s4149_s0 + $0x1e8] sm:$0xff]  ;;  %v104_v20 = vpack.c.bf16 %v63_v15, %v62_v14  ;;  %v80_v28 = vld [vmem:[%s4149_s0 + $0x1f0] sm:$0xff]  ;;  %v105_v32 = vpack.c.bf16 %v65_v27, %v64_v26 }
  0x15   :  { %v112_v21 = vpack.c.bf16 %v79_v17, %v78_v16  ;;  %v81_v29 = vld [vmem:[%s4149_s0 + $0x1f8] sm:$0xff] }
  0x16   :  { %1935 = vmatmul.msk.bf16.gmra.mxu0 %vm115_vm1, %v83_v22  ;;  %1943 = vmatmul.msk.bf16.gmra.mxu1 %vm115_vm1, %v91_v23  ;;  %v32_v22 = vld [vmem:[%s4149_s0 + $0x70] sm:$0xff]  ;;  %v33_v23 = vld [vmem:[%s4149_s0 + $0x78] sm:$0xff]  ;;  %v113_v33 = vpack.c.bf16 %v81_v29, %v80_v28 }
  0x17   :  { %1951 = vmatmul.msk.bf16.gmra.mxu2 %vm115_vm1, %v99_v24  ;;  %v48_v24 = vld [vmem:[%s4149_s0 + $0xf0] sm:$0xff]  ;;  %v89_v30 = vpack.c.bf16 %v33_v23, %v32_v22 }
  0x18   :  { %1959 = vmatmul.msk.bf16.gmra.mxu3 %vm115_vm1, %v107_v25  ;;  %v49_v25 = vld [vmem:[%s4149_s0 + $0xf8] sm:$0xff] }
  0x19   :  { %v97_v31 = vpack.c.bf16 %v49_v25, %v48_v24 }
  0x26   :  { %1936 = vmatmul.msk.bf16.gmra.mxu0 %vm115_vm1, %v84_v34  ;;  %1944 = vmatmul.msk.bf16.gmra.mxu1 %vm115_vm1, %v92_v35  ;;  %v2550_v34 = vld [vmem:[%s4150_s2] ss:$0 sm:$0xff] }
  0x27   :  { %1952 = vmatmul.msk.bf16.gmra.mxu2 %vm115_vm1, %v100_v36  ;;  %v2555_v35 = vld [vmem:[%s4151_s3] ss:$0 sm:$0xff] }
  0x28   :  { %1960 = vmatmul.msk.bf16.gmra.mxu3 %vm115_vm1, %v108_v37 }
  0x36   :  { %1937 = vmatmul.msk.bf16.gmra.mxu0 %vm115_vm1, %v85_v46  ;;  %1945 = vmatmul.msk.bf16.gmra.mxu1 %vm115_vm1, %v93_v47 }
  0x37   :  { %1953 = vmatmul.msk.bf16.gmra.mxu2 %vm115_vm1, %v101_v48 }
  0x38   :  { %1961 = vmatmul.msk.bf16.gmra.mxu3 %vm115_vm1, %v109_v49 }
  0x46   :  { %1938 = vmatmul.msk.bf16.gmra.mxu0 %vm115_vm1, %v86_v58  ;;  %1946 = vmatmul.msk.bf16.gmra.mxu1 %vm115_vm1, %v94_v59 }
  0x47   :  { %1954 = vmatmul.msk.bf16.gmra.mxu2 %vm115_vm1, %v102_v60 }
  0x48   :  { %1962 = vmatmul.msk.bf16.gmra.mxu3 %vm115_vm1, %v110_v61 }
  0x56   :  { %1939 = vmatmul.msk.bf16.gmra.mxu0 %vm115_vm1, %v87_v6  ;;  %1947 = vmatmul.msk.bf16.gmra.mxu1 %vm115_vm1, %v95_v7 }
  0x57   :  { %1955 = vmatmul.msk.bf16.gmra.mxu2 %vm115_vm1, %v103_v8 }
  0x58   :  { %1963 = vmatmul.msk.bf16.gmra.mxu3 %vm115_vm1, %v111_v9 }
  0x66   :  { %1940 = vmatmul.msk.bf16.gmra.mxu0 %vm115_vm1, %v88_v18  ;;  %1948 = vmatmul.msk.bf16.gmra.mxu1 %vm115_vm1, %v96_v19 }
  0x67   :  { %1956 = vmatmul.msk.bf16.gmra.mxu2 %vm115_vm1, %v104_v20 }
  0x68   :  { %1964 = vmatmul.msk.bf16.gmra.mxu3 %vm115_vm1, %v112_v21 }
  0x76   :  { %1941 = vmatmul.msk.bf16.gmra.mxu0 %vm115_vm1, %v89_v30  ;;  %1949 = vmatmul.msk.bf16.gmra.mxu1 %vm115_vm1, %v97_v31 }
  0x77   :  { %1957 = vmatmul.msk.bf16.gmra.mxu2 %vm115_vm1, %v105_v32 }
  0x78   :  { %1965 = vmatmul.msk.bf16.gmra.mxu3 %vm115_vm1, %v113_v33 }
  0x83   :  { %v225_v36 = vpop.f32.mrf.mxu0  ;;  %v265_v37 = vpop.f32.mrf.mxu1 }
  0x84   :  { %v389_v38 = vmul.f32 %v2550_v34, %v225_v36  ;;  %v405_v39 = vmul.f32 %v2550_v34, %v265_v37 }
  0x86   :  { %v2560_v40 = vadd.f32 %v2555_v35, %v389_v38  ;;  %v2563_v41 = vadd.f32 %v2555_v35, %v405_v39 }
  0x88   :  { %v1966_v42 = vmul.f32 -1.442695, %v2560_v40  ;;  %v1982_v43 = vmul.f32 -1.442695, %v2563_v41 }
  0x8a   :  { %2035 = vpow2.f32 %v1966_v42  ;;  %v305_v44 = vpop.f32.mrf.mxu2 }
  0x8b   :  { %v345_v45 = vpop.f32.mrf.mxu3  ;;  %2037 = vpow2.f32 %v1982_v43  ;;  %v421_v46 = vmul.f32 %v2550_v34, %v305_v44  ;;  %v227_v48 = vpop.f32.mrf.mxu0 }
  0x8c   :  { %v437_v47 = vmul.f32 %v2550_v34, %v345_v45  ;;  %v267_v49 = vpop.f32.mrf.mxu1  ;;  %v390_v50 = vmul.f32 %v2550_v34, %v227_v48 }
  0x8d   :  { %v406_v51 = vmul.f32 %v2550_v34, %v267_v49  ;;  %v2572_v52 = vadd.f32 %v2555_v35, %v421_v46 }
  0x8e   :  { %v2575_v53 = vadd.f32 %v2555_v35, %v437_v47  ;;  %v2578_v54 = vadd.f32 %v2555_v35, %v390_v50 }
  0x8f   :  { %v2581_v55 = vadd.f32 %v2555_v35, %v406_v51  ;;  %v1998_v56 = vmul.f32 -1.442695, %v2572_v52 }
  0x90   :  { %v2014_v57 = vmul.f32 -1.442695, %v2575_v53  ;;  %v2036_v58 = vpop.eup %2035  ;;  %v1967_v61 = vmul.f32 -1.442695, %v2578_v54 }
  0x91   :  { %v2038_v59 = vpop.eup %2037  ;;  %v2585_v60 = vadd.f32 1.0, %v2036_v58  ;;  %2039 = vpow2.f32 %v1998_v56  ;;  %v1983_v63 = vmul.f32 -1.442695, %v2581_v55 }
  0x92   :  { %v2588_v62 = vadd.f32 1.0, %v2038_v59  ;;  %2041 = vpow2.f32 %v2014_v57  ;;  %v307_v0 = vpop.f32.mrf.mxu2 }
  0x93   :  { %2043 = vrcp.f32 %v2585_v60  ;;  %v422_v1 = vmul.f32 %v2550_v34, %v307_v0  ;;  %v347_v2 = vpop.f32.mrf.mxu3  ;;  %v230_v3 = vpop.f32.mrf.mxu0  ;;  %v786_v4 = vand.u32 2147483647, %v2585_v60  ;;  %v788_v5 = vand.u32 2147483648, %v2585_v60 }
  0x94   :  { %2045 = vrcp.f32 %v2588_v62  ;;  %v270_v6 = vpop.f32.mrf.mxu1  ;;  %v1026_v8 = vand.u32 2147483647, %v2588_v62  ;;  %v1028_v9 = vand.u32 2147483648, %v2588_v62  ;;  %v438_v13 = vmul.f32 %v2550_v34, %v347_v2 }
  0x95   :  { %2047 = vpow2.f32 %v1967_v61  ;;  %v2599_v10 = vadd.f32 %v2555_v35, %v422_v1  ;;  %v391_v14 = vmul.f32 %v2550_v34, %v230_v3  ;;  %vm782_vm2 = vweird.f32 %v2585_v60 }
  0x96   :  { %2049 = vpow2.f32 %v1983_v63  ;;  %vm1022_vm3 = vweird.f32 %v2588_v62  ;;  %v407_v17 = vmul.f32 %v2550_v34, %v270_v6  ;;  %vm2611_vm4 = vcmp.eq.f32.partialorder %v786_v4, 8.507059e+37 }
  0x97   :  { %v2040_v7 = vpop.eup %2039  ;;  %v789_v21 = vor.u32 1.1754944e-38, %v788_v5  ;;  %vm2617_vm5 = vcmp.eq.f32.partialorder %v1026_v8, 8.507059e+37  ;;  %v1029_v25 = vor.u32 1.1754944e-38, %v1028_v9  ;;  %v1999_v26 = vmul.f32 -1.442695, %v2599_v10 }
  0x98   :  { %v2042_v11 = vpop.eup %2041  ;;  %v2601_v12 = vadd.f32 1.0, %v2040_v7  ;;  %v2624_v29 = vadd.f32 %v2555_v35, %v438_v13  ;;  %v2627_v30 = vadd.f32 %v2555_v35, %v391_v14  ;;  %v2631_v33 = vadd.f32 %v2555_v35, %v407_v17 }
  0x99   :  { %v2044_v15 = vpop.eup %2043  ;;  %v2607_v16 = vadd.f32 1.0, %v2042_v11 }
  0x9a   :  { %v2046_v18 = vpop.eup %2045  ;;  %v778_v19 = vmul.f32 %v2044_v15, %v2585_v60  ;;  %2051 = vrcp.f32 %v2601_v12  ;;  %vm783_vm6 = vweird.f32 %v2044_v15  ;;  %v1266_v32 = vand.u32 2147483647, %v2601_v12 }
  0x9b   :  { %v2048_v22 = vpop.eup %2047  ;;  %v1018_v23 = vmul.f32 %v2046_v18, %v2588_v62  ;;  %2053 = vrcp.f32 %v2607_v16  ;;  %v1268_v37 = vand.u32 2147483648, %v2601_v12  ;;  %vm1023_vm8 = vweird.f32 %v2046_v18  ;;  %vm784_vm10 = vmor %vm782_vm2, %vm783_vm6 }
  0x9c   :  { %v2050_v27 = vpop.eup %2049  ;;  %v779_v28 = vsub.f32 1.0, %v778_v19  ;;  %v2634_v38 = vadd.f32 1.0, %v2048_v22  ;;  %v1506_v43 = vand.u32 2147483647, %v2607_v16  ;;  %2055 = vpow2.f32 %v1999_v26  ;;  %vm1024_vm13 = vmor %vm1022_vm3, %vm1023_vm8 }
  0x9d   :  { %v1019_v31 = vsub.f32 1.0, %v1018_v23  ;;  %v2636_v39 = vadd.f32 1.0, %v2050_v27  ;;  %vm1262_vm9 = vweird.f32 %v2601_v12  ;;  %v1508_v46 = vand.u32 2147483648, %v2607_v16  ;;  %v310_v27 = vpop.f32.mrf.mxu2 }
  0x9e   :  { %v780_v36 = vmul.f32 %v2044_v15, %v779_v28  ;;  %2057 = vrcp.f32 %v2634_v38  ;;  %vm2646_vm11 = vcmp.eq.f32.partialorder %v1266_v32, 8.507059e+37  ;;  %vm1502_vm12 = vweird.f32 %v2607_v16 }
  0x9f   :  { %v1020_v42 = vmul.f32 %v2046_v18, %v1019_v31  ;;  %v1269_v56 = vor.u32 1.1754944e-38, %v1268_v37  ;;  %2059 = vrcp.f32 %v2636_v39  ;;  %v2015_v57 = vmul.f32 -1.442695, %v2624_v29 }
  0xa0   :  { %v2052_v44 = vpop.eup %2051  ;;  %v781_v45 = vadd.f32 %v2044_v15, %v780_v36  ;;  %vm2659_vm14 = vcmp.eq.f32.partialorder %v1506_v43, 8.507059e+37  ;;  %v1509_v1 = vor.u32 1.1754944e-38, %v1508_v46  ;;  %v801_v2 = vand.u32 2147483647, %v2634_v38 }
  0xa1   :  { %v1021_v47 = vadd.f32 %v2046_v18, %v1020_v42  ;;  %v1258_v48 = vmul.f32 %v2052_v44, %v2601_v12  ;;  %v2054_v50 = vpop.eup %2053  ;;  %vm1263_vm15 = vweird.f32 %v2052_v44  ;;  %2061 = vpow2.f32 %v2015_v57 }
  0xa2   :  { %v785_v51 = vsel %vm784_vm10, %v2044_v15, %v781_v45  ;;  %v1498_v61 = vmul.f32 %v2054_v50, %v2607_v16  ;;  %v2056_v3 = vpop.eup %2055  ;;  %vm1503_vm0 = vweird.f32 %v2054_v50  ;;  %vm1264_vm1 = vmor %vm1262_vm9, %vm1263_vm15  ;;  %vm797_vm2 = vweird.f32 %v2634_v38 }
  0xa3   :  { %v790_v58 = vsel %vm2611_vm4, %v789_v21, %v785_v51  ;;  %v1025_v59 = vsel %vm1024_vm13, %v2046_v18, %v1021_v47  ;;  %v1259_v60 = vsub.f32 1.0, %v1258_v48  ;;  %v2668_v9 = vadd.f32 1.0, %v2056_v3  ;;  %vm1504_vm4 = vmor %vm1502_vm12, %vm1503_vm0 }
  0xa4   :  { %v1737_v0 = vmul.f32 %v790_v58, %v2560_v40  ;;  %v1030_v62 = vsel %vm2617_vm5, %v1029_v25, %v1025_v59  ;;  %v1499_v6 = vsub.f32 1.0, %v1498_v61  ;;  %v2058_v7 = vpop.eup %2057  ;;  %vm2678_vm3 = vcmp.eq.f32.partialorder %v801_v2, 8.507059e+37  ;;  %v350_v59 = vpop.f32.mrf.mxu3 }
  0xa5   :  { %v1753_v4 = vmul.f32 %v1030_v62, %v2563_v41  ;;  %v1260_v5 = vmul.f32 %v2052_v44, %v1259_v60  ;;  %v793_v14 = vmul.f32 %v2058_v7, %v2634_v38  ;;  %v2060_v15 = vpop.eup %2059  ;;  %v803_v17 = vand.u32 2147483648, %v2634_v38  ;;  %v232_v60 = vpop.f32.mrf.mxu0 }
  0xa6   :  { %v1801_v8 = vpack.c.bf16 %v1737_v0, %v1737_v0  ;;  %v1500_v13 = vmul.f32 %v2054_v50, %v1499_v6  ;;  %2063 = vrcp.f32 %v2668_v9  ;;  %v1033_v12 = vmul.f32 %v2060_v15, %v2636_v39 }
  0xa7   :  { %v1817_v11 = vpack.c.bf16 %v1753_v4, %v1753_v4  ;;  %v1261_v40 = vadd.f32 %v2052_v44, %v1260_v5  ;;  %v794_v20 = vsub.f32 1.0, %v793_v14  ;;  %vm798_vm5 = vweird.f32 %v2058_v7  ;;  %v2062_v28 = vpop.eup %2061 }
  0xa8   :  { %1866 = vst.msk [vmem:[%s4152_s4] sm:$0xf] %vm1865_vm7, %v1801_v8  ;;  %v1501_v19 = vadd.f32 %v2054_v50, %v1500_v13  ;;  %vm1037_vm6 = vweird.f32 %v2636_v39  ;;  %v1041_v22 = vand.u32 2147483647, %v2636_v39  ;;  %v1034_v26 = vsub.f32 1.0, %v1033_v12  ;;  %vm799_vm9 = vmor %vm797_vm2, %vm798_vm5  ;;  %v272_v8 = vpop.f32.mrf.mxu1 }
  0xa9   :  { %1882 = vst.msk [vmem:[%s4152_s4 + $0x40] sm:$0xf] %vm1865_vm7, %v1817_v11  ;;  %v1265_v18 = vsel %vm1264_vm1, %v2052_v44, %v1261_v40  ;;  %v795_v25 = vmul.f32 %v2058_v7, %v794_v20  ;;  %vm1038_vm8 = vweird.f32 %v2060_v15  ;;  %v1043_v32 = vand.u32 2147483648, %v2636_v39 }
  0xaa   :  { %v1270_v21 = vsel %vm2646_vm11, %v1269_v56, %v1265_v18  ;;  %v1505_v24 = vsel %vm1504_vm4, %v2054_v50, %v1501_v19  ;;  %v1968_v16 = vmul.f32 -1.442695, %v2627_v30  ;;  %v1035_v43 = vmul.f32 %v2060_v15, %v1034_v26  ;;  %vm1039_vm10 = vmor %vm1037_vm6, %vm1038_vm8 }
  0xab   :  { %v1769_v23 = vmul.f32 %v1270_v21, %v2572_v52  ;;  %v1510_v31 = vsel %vm2659_vm14, %v1509_v1, %v1505_v24  ;;  %v796_v42 = vadd.f32 %v2058_v7, %v795_v25  ;;  %v804_v52 = vor.u32 1.1754944e-38, %v803_v17 }
  0xac   :  { %v1785_v37 = vmul.f32 %v1510_v31, %v2575_v53  ;;  %v2064_v44 = vpop.eup %2063  ;;  %v2705_v45 = vadd.f32 1.0, %v2062_v28  ;;  %2065 = vpow2.f32 %v1968_v16  ;;  %v1984_v46 = vmul.f32 -1.442695, %v2631_v33 }
  0xad   :  { %v1833_v36 = vpack.c.bf16 %v1769_v23, %v1769_v23  ;;  %v800_v53 = vsel %vm799_vm9, %v2058_v7, %v796_v42  ;;  %v1036_v48 = vadd.f32 %v2060_v15, %v1035_v43  ;;  %v1273_v49 = vmul.f32 %v2064_v44, %v2668_v9 }
  0xae   :  { %v1849_v47 = vpack.c.bf16 %v1785_v37, %v1785_v37  ;;  %v805_v38 = vsel %vm2678_vm3, %v804_v52, %v800_v53  ;;  %vm1042_vm11 = vcmp.eq.f32.partialorder %v1041_v22, 8.507059e+37  ;;  %v1044_v50 = vor.u32 1.1754944e-38, %v1043_v32 }
  0xaf   :  { %1898 = vst.msk [vmem:[%s4152_s4 + $0x80] sm:$0xf] %vm1865_vm7, %v1833_v36  ;;  %2067 = vrcp.f32 %v2705_v45  ;;  %v1738_v51 = vmul.f32 %v805_v38, %v2578_v54  ;;  %v1040_v56 = vsel %vm1039_vm10, %v2060_v15, %v1036_v48  ;;  %v1274_v57 = vsub.f32 1.0, %v1273_v49  ;;  %v352_v36 = vpop.f32.mrf.mxu3 }
  0xb0   :  { %1914 = vst.msk [vmem:[%s4152_s4 + $0xc0] sm:$0xf] %vm1865_vm7, %v1849_v47  ;;  %v1281_v58 = vand.u32 2147483647, %v2668_v9  ;;  %v1045_v61 = vsel %vm1042_vm11, %v1044_v50, %v1040_v56  ;;  %v1283_v39 = vand.u32 2147483648, %v2668_v9  ;;  %2069 = vpow2.f32 %v1984_v46 }
  0xb1   :  { %v423_v63 = vmul.f32 %v2550_v34, %v310_v27  ;;  %v1802_v0 = vpack.c.bf16 %v1738_v51, %v1738_v51  ;;  %v1754_v62 = vmul.f32 %v1045_v61, %v2581_v55  ;;  %v1275_v1 = vmul.f32 %v2064_v44, %v1274_v57 }
  0xb2   :  { %vm1278_vm12 = vweird.f32 %v2064_v44  ;;  %v2066_v2 = vpop.eup %2065  ;;  %vm1277_vm13 = vweird.f32 %v2668_v9  ;;  %v439_v3 = vmul.f32 %v2550_v34, %v350_v59  ;;  %v392_v4 = vmul.f32 %v2550_v34, %v232_v60  ;;  %v312_v9 = vpop.f32.mrf.mxu2 }
  0xb3   :  { %v2730_v54 = vadd.f32 %v2555_v35, %v423_v63  ;;  %1867 = vst.msk [vmem:[%s4152_s4 + $0x4] sm:$0xf] %vm1865_vm7, %v1802_v0  ;;  %v1818_v5 = vpack.c.bf16 %v1754_v62, %v1754_v62  ;;  %v1276_v6 = vadd.f32 %v2064_v44, %v1275_v1  ;;  %vm2738_vm14 = vcmp.eq.f32.partialorder %v1281_v58, 8.507059e+37  ;;  %vm1279_vm15 = vmor %vm1277_vm13, %vm1278_vm12  ;;  %v235_v63 = vpop.f32.mrf.mxu0 }
  0xb4   :  { %v2742_v7 = vadd.f32 1.0, %v2066_v2  ;;  %v1284_v40 = vor.u32 1.1754944e-38, %v1283_v39  ;;  %v2746_v14 = vadd.f32 %v2555_v35, %v439_v3  ;;  %v2749_v15 = vadd.f32 %v2555_v35, %v392_v4 }
  0xb5   :  { %v2068_v11 = vpop.eup %2067  ;;  %v2000_v13 = vmul.f32 -1.442695, %v2730_v54  ;;  %1883 = vst.msk [vmem:[%s4152_s4 + $0x44] sm:$0xf] %vm1865_vm7, %v1818_v5  ;;  %v1280_v41 = vsel %vm1279_vm15, %v2064_v44, %v1276_v6  ;;  %v1521_v18 = vand.u32 2147483647, %v2705_v45  ;;  %v408_v21 = vmul.f32 %v2550_v34, %v272_v8 }
  0xb6   :  { %v1513_v17 = vmul.f32 %v2068_v11, %v2705_v45  ;;  %2071 = vrcp.f32 %v2742_v7  ;;  %v2070_v19 = vpop.eup %2069  ;;  %v1285_v20 = vsel %vm2738_vm14, %v1284_v40, %v1280_v41  ;;  %v1523_v12 = vand.u32 2147483648, %v2705_v45 }
  0xb7   :  { %v424_v22 = vmul.f32 %v2550_v34, %v312_v9  ;;  %v1770_v23 = vmul.f32 %v1285_v20, %v2599_v10  ;;  %v2764_v25 = vadd.f32 1.0, %v2070_v19  ;;  %2073 = vpow2.f32 %v2000_v13 }
  0xb8   :  { %v1514_v24 = vsub.f32 1.0, %v1513_v17  ;;  %v816_v26 = vand.u32 2147483647, %v2742_v7  ;;  %v2016_v27 = vmul.f32 -1.442695, %v2746_v14  ;;  %vm1518_vm0 = vweird.f32 %v2068_v11 }
  0xb9   :  { %v1969_v28 = vmul.f32 -1.442695, %v2749_v15  ;;  %v1834_v31 = vpack.c.bf16 %v1770_v23, %v1770_v23  ;;  %2075 = vrcp.f32 %v2764_v25  ;;  %vm1517_vm1 = vweird.f32 %v2705_v45 }
  0xba   :  { %v1515_v32 = vmul.f32 %v2068_v11, %v1514_v24  ;;  %v818_v16 = vand.u32 2147483648, %v2742_v7  ;;  %2077 = vpow2.f32 %v2016_v27  ;;  %v2773_v10 = vadd.f32 %v2555_v35, %v408_v21  ;;  %vm1519_vm3 = vmor %vm1517_vm1, %vm1518_vm0 }
  0xbb   :  { %1899 = vst.msk [vmem:[%s4152_s4 + $0x84] sm:$0xf] %vm1865_vm7, %v1834_v31  ;;  %vm1522_vm2 = vcmp.eq.f32.partialorder %v1521_v18, 8.507059e+37  ;;  %2079 = vpow2.f32 %v1969_v28  ;;  %v2780_v43 = vadd.f32 %v2555_v35, %v424_v22  ;;  %v1524_v44 = vor.u32 1.1754944e-38, %v1523_v12 }
  0xbc   :  { %v2072_v37 = vpop.eup %2071  ;;  %v1516_v42 = vadd.f32 %v2068_v11, %v1515_v32  ;;  %vm812_vm4 = vweird.f32 %v2742_v7  ;;  %vm2784_vm5 = vcmp.eq.f32.partialorder %v816_v26, 8.507059e+37  ;;  %v1056_v53 = vand.u32 2147483647, %v2764_v25 }
  0xbd   :  { %v808_v52 = vmul.f32 %v2072_v37, %v2742_v7  ;;  %v2074_v46 = vpop.eup %2073  ;;  %v1985_v48 = vmul.f32 -1.442695, %v2773_v10  ;;  %v440_v49 = vmul.f32 %v2550_v34, %v352_v36  ;;  %v819_v51 = vor.u32 1.1754944e-38, %v818_v16 }
  0xbe   :  { %v1520_v47 = vsel %vm1519_vm3, %v2068_v11, %v1516_v42  ;;  %v2791_v56 = vadd.f32 1.0, %v2074_v46  ;;  %vm1052_vm6 = vweird.f32 %v2764_v25  ;;  %v2001_v59 = vmul.f32 -1.442695, %v2780_v43  ;;  %v275_v11 = vpop.f32.mrf.mxu1 }
  0xbf   :  { %v1525_v38 = vsel %vm1522_vm2, %v1524_v44, %v1520_v47  ;;  %v809_v50 = vsub.f32 1.0, %v808_v52  ;;  %v2076_v57 = vpop.eup %2075  ;;  %2081 = vpow2.f32 %v1985_v48  ;;  %vm813_vm8 = vweird.f32 %v2072_v37 }
  0xc0   :  { %v1786_v58 = vmul.f32 %v1525_v38, %v2624_v29  ;;  %v2078_v60 = vpop.eup %2077  ;;  %v1048_v39 = vmul.f32 %v2076_v57, %v2764_v25  ;;  %2083 = vrcp.f32 %v2791_v56  ;;  %vm2798_vm9 = vcmp.eq.f32.partialorder %v1056_v53, 8.507059e+37  ;;  %vm814_vm10 = vmor %vm812_vm4, %vm813_vm8 }
  0xc1   :  { %v810_v61 = vmul.f32 %v2072_v37, %v809_v50  ;;  %v2080_v0 = vpop.eup %2079  ;;  %v1058_v29 = vand.u32 2147483648, %v2764_v25  ;;  %v2804_v2 = vadd.f32 %v2555_v35, %v440_v49  ;;  %v2806_v5 = vadd.f32 1.0, %v2078_v60 }
  0xc2   :  { %v1850_v62 = vpack.c.bf16 %v1786_v58, %v1786_v58  ;;  %v1049_v4 = vsub.f32 1.0, %v1048_v39  ;;  %v2808_v6 = vadd.f32 1.0, %v2080_v0  ;;  %v1296_v55 = vand.u32 2147483647, %v2791_v56 }
  0xc3   :  { %v811_v3 = vadd.f32 %v2072_v37, %v810_v61  ;;  %v1298_v8 = vand.u32 2147483648, %v2791_v56  ;;  %2085 = vpow2.f32 %v2001_v59  ;;  %v393_v9 = vmul.f32 %v2550_v34, %v235_v63 }
  0xc4   :  { %1915 = vst.msk [vmem:[%s4152_s4 + $0xc4] sm:$0xf] %vm1865_vm7, %v1850_v62  ;;  %v1050_v13 = vmul.f32 %v2076_v57, %v1049_v4  ;;  %vm1053_vm11 = vweird.f32 %v2076_v57  ;;  %2087 = vrcp.f32 %v2806_v5  ;;  %v1059_v18 = vor.u32 1.1754944e-38, %v1058_v29 }
  0xc5   :  { %v815_v40 = vsel %vm814_vm10, %v2072_v37, %v811_v3  ;;  %v2082_v41 = vpop.eup %2081  ;;  %2089 = vrcp.f32 %v2808_v6  ;;  %v2017_v7 = vmul.f32 -1.442695, %v2804_v2  ;;  %vm1292_vm12 = vweird.f32 %v2791_v56  ;;  %vm1054_vm13 = vmor %vm1052_vm6, %vm1053_vm11 }
  0xc6   :  { %v820_v17 = vsel %vm2784_vm5, %v819_v51, %v815_v40  ;;  %v2084_v19 = vpop.eup %2083  ;;  %v1051_v12 = vadd.f32 %v2076_v57, %v1050_v13  ;;  %v2827_v21 = vmul.f32 %v2550_v34, %v275_v11  ;;  %vm2832_vm14 = vcmp.eq.f32.partialorder %v1296_v55, 8.507059e+37 }
  0xc7   :  { %v1739_v20 = vmul.f32 %v820_v17, %v2627_v30  ;;  %v1288_v22 = vmul.f32 %v2084_v19, %v2791_v56  ;;  %v1299_v24 = vor.u32 1.1754944e-38, %v1298_v8  ;;  %v1536_v26 = vand.u32 2147483647, %v2806_v5 }
  0xc8   :  { %v2838_v30 = vadd.f32 %v2555_v35, %v393_v9  ;;  %v1055_v28 = vsel %vm1054_vm13, %v2076_v57, %v1051_v12  ;;  %v1538_v31 = vand.u32 2147483648, %v2806_v5  ;;  %v831_v32 = vand.u32 2147483647, %v2808_v6  ;;  %v355_v12 = vpop.f32.mrf.mxu3 }
  0xc9   :  { %v1803_v27 = vpack.c.bf16 %v1739_v20, %v1739_v20  ;;  %v2086_v25 = vpop.eup %2085  ;;  %v1060_v16 = vsel %vm2798_vm9, %v1059_v18, %v1055_v28  ;;  %v1289_v36 = vsub.f32 1.0, %v1288_v22  ;;  %vm1532_vm15 = vweird.f32 %v2806_v5 }
  0xca   :  { %v2845_v37 = vadd.f32 1.0, %v2082_v41  ;;  %2091 = vpow2.f32 %v2017_v7  ;;  %v2088_v42 = vpop.eup %2087  ;;  %v1755_v44 = vmul.f32 %v1060_v16, %v2631_v33  ;;  %vm827_vm0 = vweird.f32 %v2808_v6 }
  0xcb   :  { %1868 = vst.msk [vmem:[%s4152_s4 + $0x8] sm:$0xf] %vm1865_vm7, %v1803_v27  ;;  %v833_v52 = vand.u32 2147483648, %v2808_v6  ;;  %v2854_v45 = vadd.f32 1.0, %v2086_v25  ;;  %v2090_v46 = vpop.eup %2089  ;;  %v1290_v47 = vmul.f32 %v2084_v19, %v1289_v36  ;;  %vm1293_vm1 = vweird.f32 %v2084_v19 }
  0xcc   :  { %v1528_v53 = vmul.f32 %v2088_v42, %v2806_v5  ;;  %2093 = vrcp.f32 %v2845_v37  ;;  %v1819_v48 = vpack.c.bf16 %v1755_v44, %v1755_v44  ;;  %vm2858_vm2 = vcmp.eq.f32.partialorder %v1536_v26, 8.507059e+37  ;;  %vm1294_vm4 = vmor %vm1292_vm12, %vm1293_vm1  ;;  %v315_v5 = vpop.f32.mrf.mxu2 }
  0xcd   :  { %v1539_v38 = vor.u32 1.1754944e-38, %v1538_v31  ;;  %v823_v33 = vmul.f32 %v2090_v46, %v2808_v6  ;;  %v1291_v50 = vadd.f32 %v2084_v19, %v1290_v47  ;;  %vm2863_vm3 = vcmp.eq.f32.partialorder %v831_v32, 8.507059e+37 }
  0xce   :  { %v1529_v51 = vsub.f32 1.0, %v1528_v53  ;;  %v1970_v58 = vmul.f32 -1.442695, %v2838_v30  ;;  %1884 = vst.msk [vmem:[%s4152_s4 + $0x48] sm:$0xf] %vm1865_vm7, %v1819_v48  ;;  %v834_v60 = vor.u32 1.1754944e-38, %v833_v52  ;;  %2095 = vrcp.f32 %v2854_v45 }
  0xcf   :  { %v824_v59 = vsub.f32 1.0, %v823_v33  ;;  %v1071_v61 = vand.u32 2147483647, %v2845_v37  ;;  %v1295_v63 = vsel %vm1294_vm4, %v2084_v19, %v1291_v50  ;;  %vm1533_vm5 = vweird.f32 %v2088_v42 }
  0xd0   :  { %v2092_v39 = vpop.eup %2091  ;;  %v1530_v0 = vmul.f32 %v2088_v42, %v1529_v51  ;;  %v1073_v62 = vand.u32 2147483648, %v2845_v37  ;;  %v1300_v1 = vsel %vm2832_vm14, %v1299_v24, %v1295_v63  ;;  %vm828_vm6 = vweird.f32 %v2090_v46  ;;  %vm1534_vm9 = vmor %vm1532_vm15, %vm1533_vm5  ;;  %v277_v63 = vpop.f32.mrf.mxu1 }
  0xd1   :  { %v825_v29 = vmul.f32 %v2090_v46, %v824_v59  ;;  %vm1067_vm8 = vweird.f32 %v2845_v37  ;;  %v1771_v3 = vmul.f32 %v1300_v1, %v2730_v54  ;;  %v2881_v55 = vadd.f32 1.0, %v2092_v39  ;;  %vm829_vm11 = vmor %vm827_vm0, %vm828_vm6  ;;  %v357_v1 = vpop.f32.mrf.mxu3 }
  0xd2   :  { %v2094_v56 = vpop.eup %2093  ;;  %v1531_v4 = vadd.f32 %v2088_v42, %v1530_v0  ;;  %2097 = vpow2.f32 %v1970_v58  ;;  %vm2886_vm10 = vcmp.eq.f32.partialorder %v1071_v61, 8.507059e+37  ;;  %v1311_v40 = vand.u32 2147483647, %v2854_v45  ;;  %v237_v58 = vpop.f32.mrf.mxu0 }
  0xd3   :  { %v826_v8 = vadd.f32 %v2090_v46, %v825_v29  ;;  %v1063_v9 = vmul.f32 %v2094_v56, %v2845_v37  ;;  %v1835_v13 = vpack.c.bf16 %v1771_v3, %v1771_v3  ;;  %v1074_v54 = vor.u32 1.1754944e-38, %v1073_v62 }
  0xd4   :  { %v1535_v41 = vsel %vm1534_vm9, %v2088_v42, %v1531_v4  ;;  %vm1307_vm12 = vweird.f32 %v2854_v45  ;;  %2099 = vrcp.f32 %v2881_v55  ;;  %v2096_v17 = vpop.eup %2095  ;;  %v1313_v20 = vand.u32 2147483648, %v2854_v45 }
  0xd5   :  { %v1540_v18 = vsel %vm2858_vm2, %v1539_v38, %v1535_v41  ;;  %v830_v7 = vsel %vm829_vm11, %v2090_v46, %v826_v8  ;;  %v1064_v19 = vsub.f32 1.0, %v1063_v9  ;;  %1900 = vst.msk [vmem:[%s4152_s4 + $0x88] sm:$0xf] %vm1865_vm7, %v1835_v13  ;;  %vm1068_vm13 = vweird.f32 %v2094_v56 }
  0xd6   :  { %v1787_v6 = vmul.f32 %v1540_v18, %v2746_v14  ;;  %v835_v22 = vsel %vm2863_vm3, %v834_v60, %v830_v7  ;;  %v1303_v23 = vmul.f32 %v2096_v17, %v2854_v45  ;;  %vm1308_vm14 = vweird.f32 %v2096_v17  ;;  %vm1069_vm15 = vmor %vm1067_vm8, %vm1068_vm13 }
  0xd7   :  { %v1740_v24 = vmul.f32 %v835_v22, %v2749_v15  ;;  %v1065_v26 = vmul.f32 %v2094_v56, %v1064_v19  ;;  %v1551_v27 = vand.u32 2147483647, %v2881_v55  ;;  %v2910_v25 = vadd.f32 %v2555_v35, %v2827_v21  ;;  %vm1309_vm2 = vmor %vm1307_vm12, %vm1308_vm14 }
  0xd8   :  { %v2098_v28 = vpop.eup %2097  ;;  %v1851_v31 = vpack.c.bf16 %v1787_v6, %v1787_v6  ;;  %v1304_v32 = vsub.f32 1.0, %v1303_v23  ;;  %v425_v14 = vmul.f32 %v2550_v34, %v315_v5  ;;  %v1553_v42 = vand.u32 2147483648, %v2881_v55 }
  0xd9   :  { %v1804_v16 = vpack.c.bf16 %v1740_v24, %v1740_v24  ;;  %v1066_v36 = vadd.f32 %v2094_v56, %v1065_v26  ;;  %v2914_v44 = vadd.f32 1.0, %v2098_v28  ;;  %v1986_v52 = vmul.f32 -1.442695, %v2910_v25 }
  0xda   :  { %v2100_v15 = vpop.eup %2099  ;;  %1916 = vst.msk [vmem:[%s4152_s4 + $0xc8] sm:$0xf] %vm1865_vm7, %v1851_v31  ;;  %v1305_v21 = vmul.f32 %v2096_v17, %v1304_v32  ;;  %v2925_v46 = vadd.f32 %v2555_v35, %v425_v14  ;;  %v441_v47 = vmul.f32 %v2550_v34, %v355_v12  ;;  %vm2932_vm0 = vcmp.eq.f32.partialorder %v1311_v40, 8.507059e+37 }
  0xdb   :  { %1869 = vst.msk [vmem:[%s4152_s4 + $0xc] sm:$0xf] %vm1865_vm7, %v1804_v16  ;;  %v1070_v53 = vsel %vm1069_vm15, %v2094_v56, %v1066_v36  ;;  %v1543_v37 = vmul.f32 %v2100_v15, %v2881_v55  ;;  %2101 = vrcp.f32 %v2914_v44  ;;  %v1314_v33 = vor.u32 1.1754944e-38, %v1313_v20 }
  0xdc   :  { %v1075_v49 = vsel %vm2886_vm10, %v1074_v54, %v1070_v53  ;;  %v1306_v38 = vadd.f32 %v2096_v17, %v1305_v21  ;;  %vm1547_vm1 = vweird.f32 %v2881_v55  ;;  %vm2945_vm3 = vcmp.eq.f32.partialorder %v1551_v27, 8.507059e+37  ;;  %v240_v53 = vpop.f32.mrf.mxu0 }
  0xdd   :  { %v1756_v50 = vmul.f32 %v1075_v49, %v2773_v10  ;;  %v1544_v51 = vsub.f32 1.0, %v1543_v37  ;;  %2103 = vpow2.f32 %v1986_v52  ;;  %v1554_v60 = vor.u32 1.1754944e-38, %v1553_v42  ;;  %v317_v10 = vpop.f32.mrf.mxu2 }
  0xde   :  { %v1310_v59 = vsel %vm1309_vm2, %v2096_v17, %v1306_v38  ;;  %v2002_v61 = vmul.f32 -1.442695, %v2925_v46  ;;  %v2951_v39 = vadd.f32 %v2555_v35, %v441_v47  ;;  %vm1548_vm4 = vweird.f32 %v2100_v15 }
  0xdf   :  { %v1820_v0 = vpack.c.bf16 %v1756_v50, %v1756_v50  ;;  %v1315_v45 = vsel %vm2932_vm0, %v1314_v33, %v1310_v59  ;;  %v1545_v62 = vmul.f32 %v2100_v15, %v1544_v51  ;;  %v394_v3 = vmul.f32 %v2550_v34, %v237_v58  ;;  %vm1549_vm6 = vmor %vm1547_vm1, %vm1548_vm4 }
  0xe0   :  { %v1772_v29 = vmul.f32 %v1315_v45, %v2780_v43  ;;  %2105 = vpow2.f32 %v2002_v61  ;;  %v2018_v56 = vmul.f32 -1.442695, %v2951_v39  ;;  %vm842_vm5 = vweird.f32 %v2914_v44 }
  0xe1   :  { %v2102_v4 = vpop.eup %2101  ;;  %1885 = vst.msk [vmem:[%s4152_s4 + $0x4c] sm:$0xf] %vm1865_vm7, %v1820_v0  ;;  %v1546_v8 = vadd.f32 %v2100_v15, %v1545_v62  ;;  %v410_v9 = vmul.f32 %v2550_v34, %v277_v63  ;;  %v426_v11 = vmul.f32 %v2550_v34, %v317_v10  ;;  %v442_v13 = vmul.f32 %v2550_v34, %v357_v1  ;;  %v280_v0 = vpop.f32.mrf.mxu1 }
  0xe2   :  { %v1836_v40 = vpack.c.bf16 %v1772_v29, %v1772_v29  ;;  %v838_v43 = vmul.f32 %v2102_v4, %v2914_v44  ;;  %2107 = vpow2.f32 %v2018_v56  ;;  %v2970_v5 = vadd.f32 %v2555_v35, %v394_v3 }
  0xe3   :  { %v2104_v41 = vpop.eup %2103  ;;  %v1550_v54 = vsel %vm1549_vm6, %v2100_v15, %v1546_v8  ;;  %v2973_v17 = vadd.f32 %v2555_v35, %v410_v9  ;;  %v2976_v18 = vadd.f32 %v2555_v35, %v426_v11  ;;  %v846_v19 = vand.u32 2147483647, %v2914_v44 }
  0xe4   :  { %1901 = vst.msk [vmem:[%s4152_s4 + $0x8c] sm:$0xf] %vm1865_vm7, %v1836_v40  ;;  %v1555_v55 = vsel %vm2945_vm3, %v1554_v60, %v1550_v54  ;;  %v839_v7 = vsub.f32 1.0, %v838_v43  ;;  %v2985_v20 = vadd.f32 1.0, %v2104_v41  ;;  %v848_v6 = vand.u32 2147483648, %v2914_v44  ;;  %v242_v41 = vpop.f32.mrf.mxu0 }
  0xe5   :  { %v1788_v12 = vmul.f32 %v1555_v55, %v2804_v2  ;;  %v1971_v22 = vmul.f32 -1.442695, %v2970_v5  ;;  %v1987_v23 = vmul.f32 -1.442695, %v2973_v17  ;;  %vm843_vm8 = vweird.f32 %v2102_v4 }
  0xe6   :  { %v2106_v24 = vpop.eup %2105  ;;  %v840_v26 = vmul.f32 %v2102_v4, %v839_v7  ;;  %2109 = vrcp.f32 %v2985_v20  ;;  %v2993_v27 = vadd.f32 %v2555_v35, %v442_v13  ;;  %v2003_v2 = vmul.f32 -1.442695, %v2976_v18  ;;  %vm844_vm9 = vmor %vm842_vm5, %vm843_vm8 }
  0xe7   :  { %v1852_v28 = vpack.c.bf16 %v1788_v12, %v1788_v12  ;;  %v2995_v31 = vadd.f32 1.0, %v2106_v24  ;;  %2111 = vpow2.f32 %v1971_v22  ;;  %v849_v16 = vor.u32 1.1754944e-38, %v848_v6 }
  0xe8   :  { %v2108_v32 = vpop.eup %2107  ;;  %v841_v14 = vadd.f32 %v2102_v4, %v840_v26  ;;  %2113 = vpow2.f32 %v1987_v23  ;;  %v1086_v36 = vand.u32 2147483647, %v2985_v20  ;;  %v1088_v42 = vand.u32 2147483648, %v2985_v20 }
  0xe9   :  { %1917 = vst.msk [vmem:[%s4152_s4 + $0xcc] sm:$0xf] %vm1865_vm7, %v1852_v28  ;;  %2115 = vrcp.f32 %v2995_v31  ;;  %vm847_vm10 = vcmp.eq.f32.partialorder %v846_v19, 8.507059e+37  ;;  %v3007_v21 = vadd.f32 1.0, %v2108_v32  ;;  %v2019_v52 = vmul.f32 -1.442695, %v2993_v27 }
  0xea   :  { %v845_v15 = vsel %vm844_vm9, %v2102_v4, %v841_v14  ;;  %2117 = vpow2.f32 %v2003_v2  ;;  %v1326_v37 = vand.u32 2147483647, %v2995_v31  ;;  %v1328_v49 = vand.u32 2147483648, %v2995_v31 }
  0xeb   :  { %v850_v47 = vsel %vm847_vm10, %v849_v16, %v845_v15  ;;  %2119 = vrcp.f32 %v3007_v21  ;;  %vm1082_vm11 = vweird.f32 %v2985_v20  ;;  %vm3016_vm12 = vcmp.eq.f32.partialorder %v1086_v36, 8.507059e+37 }
  0xec   :  { %v2110_v48 = vpop.eup %2109  ;;  %v1741_v44 = vmul.f32 %v850_v47, %v2838_v30  ;;  %v1089_v51 = vor.u32 1.1754944e-38, %v1088_v42  ;;  %2121 = vpow2.f32 %v2019_v52  ;;  %v395_v30 = vmul.f32 %v2550_v34, %v240_v53 }
  0xed   :  { %v2112_v38 = vpop.eup %2111  ;;  %v1078_v33 = vmul.f32 %v2110_v48, %v2985_v20  ;;  %vm1322_vm13 = vweird.f32 %v2995_v31  ;;  %v1566_v63 = vand.u32 2147483647, %v3007_v21  ;;  %vm3032_vm14 = vcmp.eq.f32.partialorder %v1326_v37, 8.507059e+37 }
  0xee   :  { %v2114_v57 = vpop.eup %2113  ;;  %v1805_v58 = vpack.c.bf16 %v1741_v44, %v1741_v44  ;;  %v3020_v59 = vadd.f32 1.0, %v2112_v38  ;;  %v1329_v1 = vor.u32 1.1754944e-38, %v1328_v49  ;;  %v1568_v29 = vand.u32 2147483648, %v3007_v21  ;;  %v320_v49 = vpop.f32.mrf.mxu2 }
  0xef   :  { %v2116_v60 = vpop.eup %2115  ;;  %v1079_v61 = vsub.f32 1.0, %v1078_v33  ;;  %v3025_v10 = vadd.f32 1.0, %v2114_v57  ;;  %vm1083_vm15 = vweird.f32 %v2110_v48  ;;  %vm1562_vm0 = vweird.f32 %v3007_v21 }
  0xf0   :  { %1870 = vst.msk [vmem:[%s4152_s4 + $0x10] sm:$0xf] %vm1865_vm7, %v1805_v58  ;;  %v1318_v45 = vmul.f32 %v2116_v60, %v2995_v31  ;;  %2123 = vrcp.f32 %v3020_v59  ;;  %v2118_v56 = vpop.eup %2117  ;;  %v863_v9 = vand.u32 2147483648, %v3020_v59  ;;  %v3042_v11 = vadd.f32 %v2555_v35, %v395_v30  ;;  %vm1084_vm2 = vmor %vm1082_vm11, %vm1083_vm15 }
  0xf1   :  { %v1080_v3 = vmul.f32 %v2110_v48, %v1079_v61  ;;  %2125 = vrcp.f32 %v3025_v10  ;;  %v2120_v4 = vpop.eup %2119  ;;  %v411_v40 = vmul.f32 %v2550_v34, %v280_v0  ;;  %vm3046_vm1 = vcmp.eq.f32.partialorder %v1566_v63, 8.507059e+37 }
  0xf2   :  { %v1319_v8 = vsub.f32 1.0, %v1318_v45  ;;  %v1558_v13 = vmul.f32 %v2120_v4, %v3007_v21  ;;  %v861_v54 = vand.u32 2147483647, %v3020_v59  ;;  %v2122_v55 = vpop.eup %2121  ;;  %vm1323_vm3 = vweird.f32 %v2116_v60 }
  0xf3   :  { %v1081_v43 = vadd.f32 %v2110_v48, %v1080_v3  ;;  %v1569_v19 = vor.u32 1.1754944e-38, %v1568_v29  ;;  %v1101_v35 = vand.u32 2147483647, %v3025_v10  ;;  %vm857_vm4 = vweird.f32 %v3020_v59  ;;  %vm1324_vm8 = vmor %vm1322_vm13, %vm1323_vm3 }
  0xf4   :  { %v1320_v7 = vmul.f32 %v2116_v60, %v1319_v8  ;;  %v1559_v34 = vsub.f32 1.0, %v1558_v13  ;;  %v1103_v6 = vand.u32 2147483648, %v3025_v10  ;;  %v3056_v22 = vadd.f32 1.0, %v2118_v56  ;;  %v360_v8 = vpop.f32.mrf.mxu3 }
  0xf5   :  { %v1085_v12 = vsel %vm1084_vm2, %v2110_v48, %v1081_v43  ;;  %vm1563_vm5 = vweird.f32 %v2120_v4  ;;  %v864_v20 = vor.u32 1.1754944e-38, %v863_v9  ;;  %vm1097_vm6 = vweird.f32 %v3025_v10 }
  0xf6   :  { %v2124_v23 = vpop.eup %2123  ;;  %v1090_v24 = vsel %vm3016_vm12, %v1089_v51, %v1085_v12  ;;  %v1321_v26 = vadd.f32 %v2116_v60, %v1320_v7  ;;  %v1560_v32 = vmul.f32 %v2120_v4, %v1559_v34  ;;  %vm3066_vm9 = vcmp.eq.f32.partialorder %v861_v54, 8.507059e+37  ;;  %vm1564_vm11 = vmor %vm1562_vm0, %vm1563_vm5  ;;  %v3132_v7 = vld [vmem:[%s4150_s2] ss:$0 sm:$0xff]  ;;  %v282_v34 = vpop.f32.mrf.mxu1 }
  0xf7   :  { %v2126_v28 = vpop.eup %2125  ;;  %v1757_v2 = vmul.f32 %v1090_v24, %v2910_v25  ;;  %v853_v14 = vmul.f32 %v2124_v23, %v3020_v59  ;;  %v3070_v36 = vadd.f32 1.0, %v2122_v55  ;;  %vm3073_vm10 = vcmp.eq.f32.partialorder %v1101_v35, 8.507059e+37 }
  0xf8   :  { %v1325_v42 = vsel %vm1324_vm8, %v2116_v60, %v1321_v26  ;;  %v1093_v15 = vmul.f32 %v2126_v28, %v3025_v10  ;;  %2127 = vrcp.f32 %v3056_v22  ;;  %v1561_v47 = vadd.f32 %v2120_v4, %v1560_v32  ;;  %v3097_v60 = vld [vmem:[%s4151_s3] ss:$0 sm:$0xff] }
  0xf9   :  { %v1821_v25 = vpack.c.bf16 %v1757_v2, %v1757_v2  ;;  %v1330_v31 = vsel %vm3032_vm14, %v1329_v1, %v1325_v42  ;;  %v854_v53 = vsub.f32 1.0, %v853_v14  ;;  %vm858_vm12 = vweird.f32 %v2124_v23 }
  0xfa   :  { %v1773_v48 = vmul.f32 %v1330_v31, %v2925_v46  ;;  %v1094_v44 = vsub.f32 1.0, %v1093_v15  ;;  %v1972_v37 = vmul.f32 -1.442695, %v3042_v11  ;;  %v1565_v38 = vsel %vm1564_vm11, %v2120_v4, %v1561_v47  ;;  %vm859_vm14 = vmor %vm857_vm4, %vm858_vm12 }
  0xfb   :  { %1886 = vst.msk [vmem:[%s4152_s4 + $0x50] sm:$0xf] %vm1865_vm7, %v1821_v25  ;;  %v855_v33 = vmul.f32 %v2124_v23, %v854_v53  ;;  %v1343_v50 = vand.u32 2147483648, %v3056_v22  ;;  %2129 = vrcp.f32 %v3070_v36  ;;  %v1570_v21 = vsel %vm3046_vm1, %v1569_v19, %v1565_v38 }
  0xfc   :  { %v1837_v46 = vpack.c.bf16 %v1773_v48, %v1773_v48  ;;  %v1095_v51 = vmul.f32 %v2126_v28, %v1094_v44  ;;  %vm1098_vm13 = vweird.f32 %v2126_v28  ;;  %v1789_v57 = vmul.f32 %v1570_v21, %v2951_v39 }
  0xfd   :  { %v856_v58 = vadd.f32 %v2124_v23, %v855_v33  ;;  %v1104_v30 = vor.u32 1.1754944e-38, %v1103_v6  ;;  %v3100_v61 = vadd.f32 %v3097_v60, %v411_v40  ;;  %vm1337_vm15 = vweird.f32 %v3056_v22  ;;  %vm1099_vm0 = vmor %vm1097_vm6, %vm1098_vm13 }
  0xfe   :  { %v2128_v63 = vpop.eup %2127  ;;  %1902 = vst.msk [vmem:[%s4152_s4 + $0x90] sm:$0xf] %vm1865_vm7, %v1837_v46  ;;  %v1096_v39 = vadd.f32 %v2126_v28, %v1095_v51  ;;  %v1341_v0 = vand.u32 2147483647, %v3056_v22  ;;  %2131 = vpow2.f32 %v1972_v37  ;;  %v1853_v45 = vpack.c.bf16 %v1789_v57, %v1789_v57 }
  0xff   :  { %v860_v62 = vsel %vm859_vm14, %v2124_v23, %v856_v58  ;;  %v1333_v1 = vmul.f32 %v2128_v63, %v3056_v22  ;;  %v1344_v29 = vor.u32 1.1754944e-38, %v1343_v50  ;;  %v1581_v3 = vand.u32 2147483647, %v3070_v36  ;;  %v362_v50 = vpop.f32.mrf.mxu3 }
 0x100   :  { %v865_v56 = vsel %vm3066_vm9, %v864_v20, %v860_v62  ;;  %v1100_v59 = vsel %vm1099_vm0, %v2126_v28, %v1096_v39  ;;  %v1583_v4 = vand.u32 2147483648, %v3070_v36  ;;  %1918 = vst.msk [vmem:[%s4152_s4 + $0xd0] sm:$0xf] %vm1865_vm7, %v1853_v45  ;;  %v1988_v13 = vmul.f32 -1.442695, %v3100_v61  ;;  %v322_v20 = vpop.f32.mrf.mxu2 }
 0x101   :  { %v2130_v9 = vpop.eup %2129  ;;  %v1742_v10 = vmul.f32 %v865_v56, %v2970_v5  ;;  %v1105_v40 = vsel %vm3073_vm10, %v1104_v30, %v1100_v59  ;;  %v1334_v43 = vsub.f32 1.0, %v1333_v1  ;;  %vm1338_vm1 = vweird.f32 %v2128_v63 }
 0x102   :  { %v1758_v54 = vmul.f32 %v1105_v40, %v2973_v17  ;;  %v1573_v55 = vmul.f32 %v2130_v9, %v3070_v36  ;;  %v427_v19 = vmul.f32 %v3132_v7, %v320_v49  ;;  %2133 = vpow2.f32 %v1988_v13  ;;  %vm1339_vm3 = vmor %vm1337_vm15, %vm1338_vm1 }
 0x103   :  { %v1806_v5 = vpack.c.bf16 %v1742_v10, %v1742_v10  ;;  %v1335_v35 = vmul.f32 %v2128_v63, %v1334_v43  ;;  %v443_v12 = vmul.f32 %v3132_v7, %v360_v8  ;;  %v396_v26 = vmul.f32 %v3132_v7, %v242_v41  ;;  %v285_v41 = vpop.f32.mrf.mxu1 }
 0x104   :  { %v2132_v6 = vpop.eup %2131  ;;  %v1822_v23 = vpack.c.bf16 %v1758_v54, %v1758_v54  ;;  %v1574_v24 = vsub.f32 1.0, %v1573_v55  ;;  %v3137_v17 = vadd.f32 %v3097_v60, %v427_v19  ;;  %vm1578_vm2 = vweird.f32 %v2130_v9 }
 0x105   :  { %1871 = vst.msk [vmem:[%s4152_s4 + $0x14] sm:$0xf] %vm1865_vm7, %v1806_v5  ;;  %v1336_v28 = vadd.f32 %v2128_v63, %v1335_v35  ;;  %v3144_v2 = vadd.f32 1.0, %v2132_v6  ;;  %v3147_v32 = vadd.f32 %v3097_v60, %v443_v12  ;;  %v3158_v42 = vadd.f32 %v3097_v60, %v396_v26 }
 0x106   :  { %1887 = vst.msk [vmem:[%s4152_s4 + $0x54] sm:$0xf] %vm1865_vm7, %v1822_v23  ;;  %v1575_v14 = vmul.f32 %v2130_v9, %v1574_v24  ;;  %v2004_v16 = vmul.f32 -1.442695, %v3137_v17  ;;  %v412_v15 = vmul.f32 %v3132_v7, %v282_v34  ;;  %vm1342_vm4 = vcmp.eq.f32.partialorder %v1341_v0, 8.507059e+37 }
 0x107   :  { %v1340_v52 = vsel %vm1339_vm3, %v2128_v63, %v1336_v28  ;;  %2135 = vrcp.f32 %v3144_v2  ;;  %v428_v25 = vmul.f32 %v3132_v7, %v322_v20  ;;  %vm1577_vm5 = vweird.f32 %v3070_v36 }
 0x108   :  { %v1345_v31 = vsel %vm1342_vm4, %v1344_v29, %v1340_v52  ;;  %v1576_v47 = vadd.f32 %v2130_v9, %v1575_v14  ;;  %2137 = vpow2.f32 %v2004_v16  ;;  %v2134_v22 = vpop.eup %2133  ;;  %vm1579_vm6 = vmor %vm1577_vm5, %vm1578_vm2  ;;  %v1584_v48 = vor.u32 1.1754944e-38, %v1583_v4 }
 0x109   :  { %v1774_v53 = vmul.f32 %v1345_v31, %v2976_v18  ;;  %v2020_v44 = vmul.f32 -1.442695, %v3147_v32  ;;  %v1973_v37 = vmul.f32 -1.442695, %v3158_v42  ;;  %vm1582_vm8 = vcmp.eq.f32.partialorder %v1581_v3, 8.507059e+37  ;;  %v245_v3 = vpop.f32.mrf.mxu0 }
 0x10a   :  { %v1580_v49 = vsel %vm1579_vm6, %v2130_v9, %v1576_v47  ;;  %v3168_v38 = vadd.f32 1.0, %v2134_v22  ;;  %v3171_v33 = vadd.f32 %v3097_v60, %v412_v15  ;;  %v3174_v18 = vadd.f32 %v3097_v60, %v428_v25 }
 0x10b   :  { %v1838_v36 = vpack.c.bf16 %v1774_v53, %v1774_v53  ;;  %v1585_v46 = vsel %vm1582_vm8, %v1584_v48, %v1580_v49  ;;  %2139 = vpow2.f32 %v2020_v44  ;;  %v876_v51 = vand.u32 2147483647, %v3144_v2 }
 0x10c   :  { %v1790_v21 = vmul.f32 %v1585_v46, %v2993_v27  ;;  %2141 = vrcp.f32 %v3168_v38  ;;  %v878_v58 = vand.u32 2147483648, %v3144_v2  ;;  %v1989_v30 = vmul.f32 -1.442695, %v3171_v33 }
 0x10d   :  { %v2136_v57 = vpop.eup %2135  ;;  %1903 = vst.msk [vmem:[%s4152_s4 + $0x94] sm:$0xf] %vm1865_vm7, %v1838_v36  ;;  %2143 = vpow2.f32 %v1973_v37  ;;  %v444_v63 = vmul.f32 %v3132_v7, %v362_v50  ;;  %v1116_v45 = vand.u32 2147483647, %v3168_v38  ;;  %v1118_v62 = vand.u32 2147483648, %v3168_v38 }
 0x10e   :  { %v2138_v39 = vpop.eup %2137  ;;  %v1854_v0 = vpack.c.bf16 %v1790_v21, %v1790_v21  ;;  %v868_v27 = vmul.f32 %v2136_v57, %v3144_v2  ;;  %2145 = vpow2.f32 %v1989_v30  ;;  %v2005_v29 = vmul.f32 -1.442695, %v3174_v18 }
 0x10f   :  { %v3189_v1 = vadd.f32 1.0, %v2138_v39  ;;  %vm872_vm9 = vweird.f32 %v3144_v2  ;;  %v3198_v59 = vadd.f32 %v3097_v60, %v444_v63  ;;  %vm3200_vm10 = vcmp.eq.f32.partialorder %v876_v51, 8.507059e+37 }
 0x110   :  { %1919 = vst.msk [vmem:[%s4152_s4 + $0xd4] sm:$0xf] %vm1865_vm7, %v1854_v0  ;;  %v869_v56 = vsub.f32 1.0, %v868_v27  ;;  %v879_v9 = vor.u32 1.1754944e-38, %v878_v58  ;;  %vm1112_vm11 = vweird.f32 %v3168_v38  ;;  %vm873_vm12 = vweird.f32 %v2136_v57 }
 0x111   :  { %v2140_v4 = vpop.eup %2139  ;;  %2147 = vrcp.f32 %v3189_v1  ;;  %v2021_v13 = vmul.f32 -1.442695, %v3198_v59  ;;  %vm3210_vm13 = vcmp.eq.f32.partialorder %v1116_v45, 8.507059e+37  ;;  %v1119_v5 = vor.u32 1.1754944e-38, %v1118_v62  ;;  %vm874_vm14 = vmor %vm872_vm9, %vm873_vm12 }
 0x112   :  { %v2142_v10 = vpop.eup %2141  ;;  %v870_v40 = vmul.f32 %v2136_v57, %v869_v56  ;;  %v3206_v43 = vadd.f32 1.0, %v2140_v4  ;;  %2149 = vpow2.f32 %v2005_v29  ;;  %v397_v35 = vmul.f32 %v3132_v7, %v245_v3 }
 0x113   :  { %v2144_v54 = vpop.eup %2143  ;;  %v1108_v55 = vmul.f32 %v2142_v10, %v3168_v38  ;;  %v1356_v34 = vand.u32 2147483647, %v3189_v1  ;;  %v1358_v6 = vand.u32 2147483648, %v3189_v1  ;;  %vm1113_vm15 = vweird.f32 %v2142_v10 }
 0x114   :  { %v871_v12 = vadd.f32 %v2136_v57, %v870_v40  ;;  %2151 = vrcp.f32 %v3206_v43  ;;  %v2146_v23 = vpop.eup %2145  ;;  %v3221_v26 = vadd.f32 1.0, %v2144_v54  ;;  %v3224_v20 = vmul.f32 %v3132_v7, %v285_v41  ;;  %vm1114_vm3 = vmor %vm1112_vm11, %vm1113_vm15 }
 0x115   :  { %v1109_v24 = vsub.f32 1.0, %v1108_v55  ;;  %vm1352_vm0 = vweird.f32 %v3189_v1  ;;  %v1596_v14 = vand.u32 2147483647, %v3206_v43  ;;  %v3228_v16 = vadd.f32 1.0, %v2146_v23 }
 0x116   :  { %v875_v28 = vsel %vm874_vm14, %v2136_v57, %v871_v12  ;;  %2153 = vpow2.f32 %v2021_v13  ;;  %v1598_v25 = vand.u32 2147483648, %v3206_v43  ;;  %vm3236_vm1 = vcmp.eq.f32.partialorder %v1356_v34, 8.507059e+37 }
 0x117   :  { %v2148_v15 = vpop.eup %2147  ;;  %v880_v2 = vsel %vm3200_vm10, %v879_v9, %v875_v28  ;;  %v1110_v52 = vmul.f32 %v2142_v10, %v1109_v24  ;;  %2155 = vrcp.f32 %v3221_v26  ;;  %v1359_v53 = vor.u32 1.1754944e-38, %v1358_v6 }
 0x118   :  { %v1743_v31 = vmul.f32 %v880_v2, %v3042_v11  ;;  %v1348_v47 = vmul.f32 %v2148_v15, %v3189_v1  ;;  %v2150_v48 = vpop.eup %2149  ;;  %vm1592_vm2 = vweird.f32 %v3206_v43  ;;  %2157 = vrcp.f32 %v3228_v16 }
 0x119   :  { %v1111_v44 = vadd.f32 %v2142_v10, %v1110_v52  ;;  %v3243_v37 = vadd.f32 %v3097_v60, %v397_v35  ;;  %v891_v36 = vand.u32 2147483647, %v3221_v26  ;;  %v893_v46 = vand.u32 2147483648, %v3221_v26 }
 0x11a   :  { %v2152_v49 = vpop.eup %2151  ;;  %v1807_v50 = vpack.c.bf16 %v1743_v31, %v1743_v31  ;;  %v1349_v11 = vsub.f32 1.0, %v1348_v47  ;;  %vm1353_vm4 = vweird.f32 %v2148_v15  ;;  %vm3251_vm5 = vcmp.eq.f32.partialorder %v1596_v14, 8.507059e+37 }
 0x11b   :  { %v1115_v21 = vsel %vm1114_vm3, %v2142_v10, %v1111_v44  ;;  %v1588_v51 = vmul.f32 %v2152_v49, %v3206_v43  ;;  %v1599_v58 = vor.u32 1.1754944e-38, %v1598_v25  ;;  %vm887_vm6 = vweird.f32 %v3221_v26  ;;  %vm1354_vm11 = vmor %vm1352_vm0, %vm1353_vm4  ;;  %v365_v43 = vpop.f32.mrf.mxu3 }
 0x11c   :  { %v2154_v30 = vpop.eup %2153  ;;  %1872 = vst.msk [vmem:[%s4152_s4 + $0x18] sm:$0xf] %vm1865_vm7, %v1807_v50  ;;  %v1120_v38 = vsel %vm3210_vm13, %v1119_v5, %v1115_v21  ;;  %v1350_v63 = vmul.f32 %v2148_v15, %v1349_v11  ;;  %v1131_v39 = vand.u32 2147483647, %v3228_v16  ;;  %vm1593_vm8 = vweird.f32 %v2152_v49  ;;  %v325_v5 = vpop.f32.mrf.mxu2 }
 0x11d   :  { %v2156_v0 = vpop.eup %2155  ;;  %v1759_v27 = vmul.f32 %v1120_v38, %v3100_v61  ;;  %v1589_v45 = vsub.f32 1.0, %v1588_v51  ;;  %v3264_v62 = vadd.f32 1.0, %v2150_v48  ;;  %vm3267_vm9 = vcmp.eq.f32.partialorder %v891_v36, 8.507059e+37  ;;  %vm1594_vm13 = vmor %vm1592_vm2, %vm1593_vm8  ;;  %v247_v21 = vpop.f32.mrf.mxu0 }
 0x11e   :  { %v1351_v29 = vadd.f32 %v2148_v15, %v1350_v63  ;;  %v883_v56 = vmul.f32 %v2156_v0, %v3221_v26  ;;  %v894_v4 = vor.u32 1.1754944e-38, %v893_v46  ;;  %vm1127_vm10 = vweird.f32 %v3228_v16  ;;  %v2158_v8 = vpop.eup %2157 }
 0x11f   :  { %v1823_v9 = vpack.c.bf16 %v1759_v27, %v1759_v27  ;;  %v1590_v61 = vmul.f32 %v2152_v49, %v1589_v45  ;;  %2159 = vrcp.f32 %v3264_v62  ;;  %v3276_v10 = vadd.f32 1.0, %v2154_v30 }
 0x120   :  { %v1355_v40 = vsel %vm1354_vm11, %v2148_v15, %v1351_v29  ;;  %v884_v13 = vsub.f32 1.0, %v883_v56  ;;  %v1123_v41 = vmul.f32 %v2158_v8, %v3228_v16  ;;  %v1133_v54 = vand.u32 2147483648, %v3228_v16 }
 0x121   :  { %1888 = vst.msk [vmem:[%s4152_s4 + $0x58] sm:$0xf] %vm1865_vm7, %v1823_v9  ;;  %v1360_v1 = vsel %vm3236_vm1, %v1359_v53, %v1355_v40  ;;  %v1591_v55 = vadd.f32 %v2152_v49, %v1590_v61  ;;  %vm888_vm12 = vweird.f32 %v2156_v0  ;;  %v1371_v19 = vand.u32 2147483647, %v3264_v62 }
 0x122   :  { %v1775_v35 = vmul.f32 %v1360_v1, %v3137_v17  ;;  %v885_v12 = vmul.f32 %v2156_v0, %v884_v13  ;;  %v1124_v34 = vsub.f32 1.0, %v1123_v41  ;;  %v1373_v6 = vand.u32 2147483648, %v3264_v62  ;;  %vm889_vm0 = vmor %vm887_vm6, %vm888_vm12 }
 0x123   :  { %v1595_v23 = vsel %vm1594_vm13, %v2152_v49, %v1591_v55  ;;  %vm1128_vm14 = vweird.f32 %v2158_v8  ;;  %vm3292_vm15 = vcmp.eq.f32.partialorder %v1131_v39, 8.507059e+37  ;;  %2161 = vrcp.f32 %v3276_v10 }
 0x124   :  { %v1839_v28 = vpack.c.bf16 %v1775_v35, %v1775_v35  ;;  %v1600_v17 = vsel %vm3251_vm5, %v1599_v58, %v1595_v23  ;;  %v886_v14 = vadd.f32 %v2156_v0, %v885_v12  ;;  %v1125_v15 = vmul.f32 %v2158_v8, %v1124_v34  ;;  %vm1129_vm3 = vmor %vm1127_vm10, %vm1128_vm14 }
 0x125   :  { %v2160_v2 = vpop.eup %2159  ;;  %v1791_v52 = vmul.f32 %v1600_v17, %v3147_v32  ;;  %v1134_v25 = vor.u32 1.1754944e-38, %v1133_v54  ;;  %vm1367_vm1 = vweird.f32 %v3264_v62  ;;  %v1374_v31 = vor.u32 1.1754944e-38, %v1373_v6 }
 0x126   :  { %1904 = vst.msk [vmem:[%s4152_s4 + $0x98] sm:$0xf] %vm1865_vm7, %v1839_v28  ;;  %v890_v47 = vsel %vm889_vm0, %v2156_v0, %v886_v14  ;;  %v1126_v22 = vadd.f32 %v2158_v8, %v1125_v15  ;;  %v1363_v53 = vmul.f32 %v2160_v2, %v3264_v62  ;;  %vm3309_vm2 = vcmp.eq.f32.partialorder %v1371_v19, 8.507059e+37  ;;  %v287_v0 = vpop.f32.mrf.mxu1  ;;  %v367_v62 = vpop.f32.mrf.mxu3 }
 0x127   :  { %v1611_v32 = vand.u32 2147483647, %v3276_v10  ;;  %v1855_v26 = vpack.c.bf16 %v1791_v52, %v1791_v52  ;;  %v895_v44 = vsel %vm3267_vm9, %v894_v4, %v890_v47  ;;  %vm1368_vm4 = vweird.f32 %v2160_v2  ;;  %v250_v14 = vpop.f32.mrf.mxu0 }
 0x128   :  { %v1613_v49 = vand.u32 2147483648, %v3276_v10  ;;  %v1744_v50 = vmul.f32 %v895_v44, %v3158_v42  ;;  %v1130_v11 = vsel %vm1129_vm3, %v2158_v8, %v1126_v22  ;;  %v1364_v36 = vsub.f32 1.0, %v1363_v53  ;;  %vm1369_vm8 = vmor %vm1367_vm1, %vm1368_vm4 }
 0x129   :  { %vm1607_vm5 = vweird.f32 %v3276_v10  ;;  %v1974_v46 = vmul.f32 -1.442695, %v3243_v37  ;;  %v2162_v51 = vpop.eup %2161  ;;  %1920 = vst.msk [vmem:[%s4152_s4 + $0xd8] sm:$0xf] %vm1865_vm7, %v1855_v26  ;;  %v1135_v16 = vsel %vm3292_vm15, %v1134_v25, %v1130_v11  ;;  %v3331_v57 = vadd.f32 %v3097_v60, %v3224_v20  ;;  %v327_v20 = vpop.f32.mrf.mxu2 }
 0x12a   :  { %v429_v42 = vmul.f32 %v3132_v7, %v325_v5  ;;  %v445_v58 = vmul.f32 %v3132_v7, %v365_v43  ;;  %v1808_v30 = vpack.c.bf16 %v1744_v50, %v1744_v50  ;;  %v1760_v38 = vmul.f32 %v1135_v16, %v3171_v33 }
 0x12b   :  { %v1365_v63 = vmul.f32 %v2160_v2, %v1364_v36  ;;  %v1603_v39 = vmul.f32 %v2162_v51, %v3276_v10  ;;  %vm1608_vm6 = vweird.f32 %v2162_v51  ;;  %2163 = vpow2.f32 %v1974_v46 }
 0x12c   :  { %v1990_v27 = vmul.f32 -1.442695, %v3331_v57  ;;  %v3339_v45 = vadd.f32 %v3097_v60, %v429_v42  ;;  %1873 = vst.msk [vmem:[%s4152_s4 + $0x1c] sm:$0xf] %vm1865_vm7, %v1808_v30  ;;  %v1824_v29 = vpack.c.bf16 %v1760_v38, %v1760_v38  ;;  %v3346_v3 = vadd.f32 %v3097_v60, %v445_v58  ;;  %vm1609_vm10 = vmor %vm1607_vm5, %vm1608_vm6 }
 0x12d   :  { %v1366_v56 = vadd.f32 %v2160_v2, %v1365_v63  ;;  %v1604_v33 = vsub.f32 1.0, %v1603_v39  ;;  %v398_v8 = vmul.f32 %v3132_v7, %v247_v21  ;;  %v414_v9 = vmul.f32 %v3132_v7, %v287_v0 }
 0x12e   :  { %2165 = vpow2.f32 %v1990_v27  ;;  %v2006_v4 = vmul.f32 -1.442695, %v3339_v45  ;;  %1889 = vst.msk [vmem:[%s4152_s4 + $0x5c] sm:$0xf] %vm1865_vm7, %v1824_v29  ;;  %v2022_v13 = vmul.f32 -1.442695, %v3346_v3  ;;  %v430_v41 = vmul.f32 %v3132_v7, %v327_v20 }
 0x12f   :  { %v1370_v61 = vsel %vm1369_vm8, %v2160_v2, %v1366_v56  ;;  %v1605_v40 = vmul.f32 %v2162_v51, %v1604_v33  ;;  %v3363_v1 = vadd.f32 %v3097_v60, %v398_v8  ;;  %v3366_v55 = vadd.f32 %v3097_v60, %v414_v9 }
 0x130   :  { %v1375_v54 = vsel %vm3309_vm2, %v1374_v31, %v1370_v61  ;;  %2167 = vpow2.f32 %v2006_v4  ;;  %vm1612_vm9 = vcmp.eq.f32.partialorder %v1611_v32, 8.507059e+37  ;;  %v1614_v12 = vor.u32 1.1754944e-38, %v1613_v49 }
 0x131   :  { %v1776_v19 = vmul.f32 %v1375_v54, %v3174_v18  ;;  %v1606_v5 = vadd.f32 %v2162_v51, %v1605_v40  ;;  %2169 = vpow2.f32 %v2022_v13  ;;  %v2164_v35 = vpop.eup %2163  ;;  %v1975_v34 = vmul.f32 -1.442695, %v3363_v1 }
 0x132   :  { %v3374_v6 = vadd.f32 %v3097_v60, %v430_v41  ;;  %v446_v23 = vmul.f32 %v3132_v7, %v367_v62  ;;  %v3377_v17 = vadd.f32 1.0, %v2164_v35  ;;  %v1991_v18 = vmul.f32 -1.442695, %v3366_v55 }
 0x133   :  { %v1840_v24 = vpack.c.bf16 %v1776_v19, %v1776_v19  ;;  %v1610_v28 = vsel %vm1609_vm10, %v2162_v51, %v1606_v5  ;;  %2171 = vpow2.f32 %v1975_v34  ;;  %v399_v47 = vmul.f32 %v3132_v7, %v250_v14  ;;  %v252_v14 = vpop.f32.mrf.mxu0 }
 0x134   :  { %v2166_v15 = vpop.eup %2165  ;;  %v1615_v43 = vsel %vm1612_vm9, %v1614_v12, %v1610_v28  ;;  %v3381_v10 = vadd.f32 %v3097_v60, %v446_v23  ;;  %2173 = vrcp.f32 %v3377_v17  ;;  %v2007_v31 = vmul.f32 -1.442695, %v3374_v6 }
 0x135   :  { %1905 = vst.msk [vmem:[%s4152_s4 + $0x9c] sm:$0xf] %vm1865_vm7, %v1840_v24  ;;  %v1792_v2 = vmul.f32 %v1615_v43, %v3198_v59  ;;  %v3389_v25 = vadd.f32 1.0, %v2166_v15  ;;  %2175 = vpow2.f32 %v1991_v18  ;;  %v906_v59 = vand.u32 2147483647, %v3377_v17 }
 0x136   :  { %v2168_v52 = vpop.eup %2167  ;;  %v2023_v32 = vmul.f32 -1.442695, %v3381_v10  ;;  %v908_v26 = vand.u32 2147483648, %v3377_v17  ;;  %v3408_v11 = vadd.f32 %v3097_v60, %v399_v47  ;;  %vm902_vm11 = vweird.f32 %v3377_v17 }
 0x137   :  { %v2170_v22 = vpop.eup %2169  ;;  %v1856_v53 = vpack.c.bf16 %v1792_v2, %v1792_v2  ;;  %v3393_v48 = vadd.f32 1.0, %v2168_v52  ;;  %2177 = vrcp.f32 %v3389_v25  ;;  %v1148_v49 = vand.u32 2147483648, %v3389_v25 }
 0x138   :  { %v3405_v50 = vadd.f32 1.0, %v2170_v22  ;;  %v1146_v46 = vand.u32 2147483647, %v3389_v25  ;;  %vm3418_vm12 = vcmp.eq.f32.partialorder %v906_v59, 8.507059e+37  ;;  %v909_v38 = vor.u32 1.1754944e-38, %v908_v26 }
 0x139   :  { %1921 = vst.msk [vmem:[%s4152_s4 + $0xdc] sm:$0xf] %vm1865_vm7, %v1856_v53  ;;  %2179 = vrcp.f32 %v3393_v48  ;;  %v2172_v44 = vpop.eup %2171  ;;  %v1388_v21 = vand.u32 2147483648, %v3393_v48  ;;  %v1386_v42 = vand.u32 2147483647, %v3393_v48  ;;  %vm1142_vm13 = vweird.f32 %v3389_v25 }
 0x13a   :  { %2181 = vpow2.f32 %v2007_v31  ;;  %v2174_v36 = vpop.eup %2173  ;;  %v3412_v51 = vadd.f32 1.0, %v2172_v44  ;;  %v1149_v0 = vor.u32 1.1754944e-38, %v1148_v49  ;;  %vm1382_vm14 = vweird.f32 %v3393_v48 }
 0x13b   :  { %2183 = vpow2.f32 %v2023_v32  ;;  %v898_v16 = vmul.f32 %v2174_v36, %v3377_v17  ;;  %v2176_v58 = vpop.eup %2175  ;;  %v1628_v27 = vand.u32 2147483648, %v3405_v50  ;;  %v1976_v20 = vmul.f32 -1.442695, %v3408_v11 }
 0x13c   :  { %2185 = vrcp.f32 %v3405_v50  ;;  %vm903_vm15 = vweird.f32 %v2174_v36  ;;  %vm3428_vm0 = vcmp.eq.f32.partialorder %v1146_v46, 8.507059e+37  ;;  %v1389_v4 = vor.u32 1.1754944e-38, %v1388_v21 }
 0x13d   :  { %2187 = vrcp.f32 %v3412_v51  ;;  %v2178_v63 = vpop.eup %2177  ;;  %v899_v39 = vsub.f32 1.0, %v898_v16  ;;  %v1626_v8 = vand.u32 2147483647, %v3405_v50  ;;  %vm3434_vm1 = vcmp.eq.f32.partialorder %v1386_v42, 8.507059e+37  ;;  %vm904_vm6 = vmor %vm902_vm11, %vm903_vm15 }
 0x13e   :  { %v1138_v56 = vmul.f32 %v2178_v63, %v3389_v25  ;;  %v921_v41 = vand.u32 2147483647, %v3412_v51  ;;  %v923_v62 = vand.u32 2147483648, %v3412_v51  ;;  %vm1143_vm2 = vweird.f32 %v2178_v63  ;;  %v290_v25 = vpop.f32.mrf.mxu1 }
 0x13f   :  { %v2180_v29 = vpop.eup %2179  ;;  %v900_v61 = vmul.f32 %v2174_v36, %v899_v39  ;;  %vm1622_vm3 = vweird.f32 %v3405_v50  ;;  %v3441_v5 = vadd.f32 1.0, %v2176_v58  ;;  %v1629_v23 = vor.u32 1.1754944e-38, %v1628_v27  ;;  %vm1144_vm10 = vmor %vm1142_vm13, %vm1143_vm2 }
 0x140   :  { %v2182_v9 = vpop.eup %2181  ;;  %v1378_v40 = vmul.f32 %v2180_v29, %v3393_v48  ;;  %v1139_v19 = vsub.f32 1.0, %v1138_v56  ;;  %vm1383_vm4 = vweird.f32 %v2180_v29  ;;  %vm917_vm5 = vweird.f32 %v3412_v51 }
 0x141   :  { %v2184_v54 = vpop.eup %2183  ;;  %v901_v12 = vadd.f32 %v2174_v36, %v900_v61  ;;  %vm3448_vm8 = vcmp.eq.f32.partialorder %v1626_v8, 8.507059e+37  ;;  %2189 = vrcp.f32 %v3441_v5  ;;  %v3453_v15 = vadd.f32 1.0, %v2182_v9  ;;  %vm1384_vm15 = vmor %vm1382_vm14, %vm1383_vm4 }
 0x142   :  { %v2186_v35 = vpop.eup %2185  ;;  %v1379_v34 = vsub.f32 1.0, %v1378_v40  ;;  %v1140_v28 = vmul.f32 %v2178_v63, %v1139_v19  ;;  %vm3456_vm9 = vcmp.eq.f32.partialorder %v921_v41, 8.507059e+37  ;;  %v924_v17 = vor.u32 1.1754944e-38, %v923_v62 }
 0x143   :  { %v2188_v24 = vpop.eup %2187  ;;  %v1618_v18 = vmul.f32 %v2186_v35, %v3405_v50  ;;  %v905_v43 = vsel %vm904_vm6, %v2174_v36, %v901_v12  ;;  %2191 = vpow2.f32 %v1976_v20  ;;  %vm1623_vm11 = vweird.f32 %v2186_v35 }
 0x144   :  { %v1380_v2 = vmul.f32 %v2180_v29, %v1379_v34  ;;  %v913_v52 = vmul.f32 %v2188_v24, %v3412_v51  ;;  %v910_v47 = vsel %vm3418_vm12, %v909_v38, %v905_v43  ;;  %v1141_v22 = vadd.f32 %v2178_v63, %v1140_v28  ;;  %vm1624_vm12 = vmor %vm1622_vm3, %vm1623_vm11 }
 0x145   :  { %v1619_v53 = vsub.f32 1.0, %v1618_v18  ;;  %v1745_v32 = vmul.f32 %v910_v47, %v3243_v37  ;;  %vm918_vm6 = vweird.f32 %v2188_v24  ;;  %2193 = vrcp.f32 %v3453_v15 }
 0x146   :  { %v1381_v59 = vadd.f32 %v2180_v29, %v1380_v2  ;;  %v914_v26 = vsub.f32 1.0, %v913_v52  ;;  %v1145_v44 = vsel %vm1144_vm10, %v2178_v63, %v1141_v22  ;;  %v1161_v48 = vand.u32 2147483647, %v3441_v5  ;;  %vm919_vm13 = vmor %vm917_vm5, %vm918_vm6  ;;  %v292_v31 = vpop.f32.mrf.mxu1 }
 0x147   :  { %v1620_v49 = vmul.f32 %v2186_v35, %v1619_v53  ;;  %v1809_v36 = vpack.c.bf16 %v1745_v32, %v1745_v32  ;;  %v1150_v37 = vsel %vm3428_vm0, %v1149_v0, %v1145_v44  ;;  %v2190_v16 = vpop.eup %2189  ;;  %v1163_v39 = vand.u32 2147483648, %v3441_v5 }
 0x148   :  { %v1385_v46 = vsel %vm1384_vm15, %v2180_v29, %v1381_v59  ;;  %v915_v21 = vmul.f32 %v2188_v24, %v914_v26  ;;  %v1761_v42 = vmul.f32 %v1150_v37, %v3331_v57  ;;  %v1153_v57 = vmul.f32 %v2190_v16, %v3441_v5 }
 0x149   :  { %v1390_v58 = vsel %vm3434_vm1, %v1389_v4, %v1385_v46  ;;  %v1621_v30 = vadd.f32 %v2186_v35, %v1620_v49  ;;  %1874 = vst.msk [vmem:[%s4152_s4 + $0x20] sm:$0xf] %vm1865_vm7, %v1809_v36  ;;  %v2192_v0 = vpop.eup %2191  ;;  %vm1157_vm14 = vweird.f32 %v3441_v5  ;;  %v3490_v29 = vadd.f32 1.0, %v2184_v54  ;;  %v330_v4 = vpop.f32.mrf.mxu2 }
 0x14a   :  { %v1777_v38 = vmul.f32 %v1390_v58, %v3339_v45  ;;  %v916_v63 = vadd.f32 %v2188_v24, %v915_v21  ;;  %v1825_v27 = vpack.c.bf16 %v1761_v42, %v1761_v42  ;;  %v1154_v33 = vsub.f32 1.0, %v1153_v57 }
 0x14b   :  { %v1625_v20 = vsel %vm1624_vm12, %v2186_v35, %v1621_v30  ;;  %v2194_v8 = vpop.eup %2193  ;;  %vm1158_vm0 = vweird.f32 %v2190_v16  ;;  %vm3501_vm1 = vcmp.eq.f32.partialorder %v1161_v48, 8.507059e+37  ;;  %v1164_v41 = vor.u32 1.1754944e-38, %v1163_v39  ;;  %v370_v35 = vpop.f32.mrf.mxu3 }
 0x14c   :  { %v1841_v45 = vpack.c.bf16 %v1777_v38, %v1777_v38  ;;  %v1630_v50 = vsel %vm3448_vm8, %v1629_v23, %v1625_v20  ;;  %v920_v56 = vsel %vm919_vm13, %v2188_v24, %v916_v63  ;;  %1890 = vst.msk [vmem:[%s4152_s4 + $0x60] sm:$0xf] %vm1865_vm7, %v1825_v27  ;;  %v1155_v13 = vmul.f32 %v2190_v16, %v1154_v33  ;;  %vm1159_vm3 = vmor %vm1157_vm14, %vm1158_vm0 }
 0x14d   :  { %v1793_v51 = vmul.f32 %v1630_v50, %v3346_v3  ;;  %v925_v9 = vsel %vm3456_vm9, %v924_v17, %v920_v56  ;;  %v1393_v62 = vmul.f32 %v2194_v8, %v3453_v15  ;;  %v1401_v54 = vand.u32 2147483647, %v3453_v15 }
 0x14e   :  { %1906 = vst.msk [vmem:[%s4152_s4 + $0xa0] sm:$0xf] %vm1865_vm7, %v1841_v45  ;;  %v1746_v40 = vmul.f32 %v925_v9, %v3363_v1  ;;  %v1403_v19 = vand.u32 2147483648, %v3453_v15  ;;  %2195 = vrcp.f32 %v3490_v29  ;;  %v1156_v34 = vadd.f32 %v2190_v16, %v1155_v13  ;;  %v295_v61 = vpop.f32.mrf.mxu1 }
 0x14f   :  { %v1857_v3 = vpack.c.bf16 %v1793_v51, %v1793_v51  ;;  %v1394_v23 = vsub.f32 1.0, %v1393_v62  ;;  %vm1398_vm2 = vweird.f32 %v2194_v8  ;;  %v1641_v1 = vand.u32 2147483647, %v3490_v29 }
 0x150   :  { %v1810_v12 = vpack.c.bf16 %v1746_v40, %v1746_v40  ;;  %v1643_v24 = vand.u32 2147483648, %v3490_v29  ;;  %v3523_v28 = vadd.f32 1.0, %v2192_v0  ;;  %v415_v18 = vmul.f32 %v3132_v7, %v290_v25 }
 0x151   :  { %1922 = vst.msk [vmem:[%s4152_s4 + $0xe0] sm:$0xf] %vm1865_vm7, %v1857_v3  ;;  %v1160_v43 = vsel %vm1159_vm3, %v2190_v16, %v1156_v34  ;;  %v1395_v2 = vmul.f32 %v2194_v8, %v1394_v23  ;;  %v431_v52 = vmul.f32 %v3132_v7, %v330_v4  ;;  %v447_v5 = vmul.f32 %v3132_v7, %v370_v35  ;;  %v332_v46 = vpop.f32.mrf.mxu2  ;;  %v255_v4 = vpop.f32.mrf.mxu0 }
 0x152   :  { %1875 = vst.msk [vmem:[%s4152_s4 + $0x24] sm:$0xf] %vm1865_vm7, %v1810_v12  ;;  %v1165_v17 = vsel %vm3501_vm1, %v1164_v41, %v1160_v43  ;;  %vm1397_vm4 = vweird.f32 %v3453_v15  ;;  %2197 = vrcp.f32 %v3523_v28  ;;  %vm1402_vm5 = vcmp.eq.f32.partialorder %v1401_v54, 8.507059e+37 }
 0x153   :  { %v1762_v47 = vmul.f32 %v1165_v17, %v3366_v55  ;;  %v1396_v22 = vadd.f32 %v2194_v8, %v1395_v2  ;;  %v1404_v53 = vor.u32 1.1754944e-38, %v1403_v19  ;;  %vm1399_vm8 = vmor %vm1397_vm4, %vm1398_vm2  ;;  %vm1637_vm9 = vweird.f32 %v3490_v29  ;;  %v372_v27 = vpop.f32.mrf.mxu3 }
 0x154   :  { %v2196_v32 = vpop.eup %2195  ;;  %v3540_v59 = vadd.f32 %v3097_v60, %v415_v18  ;;  %v3543_v26 = vadd.f32 %v3097_v60, %v431_v52  ;;  %v3546_v15 = vadd.f32 %v3097_v60, %v447_v5  ;;  %vm3549_vm10 = vcmp.eq.f32.partialorder %v1641_v1, 8.507059e+37 }
 0x155   :  { %v1826_v44 = vpack.c.bf16 %v1762_v47, %v1762_v47  ;;  %v1400_v49 = vsel %vm1399_vm8, %v2194_v8, %v1396_v22  ;;  %v1633_v55 = vmul.f32 %v2196_v32, %v3490_v29  ;;  %v1644_v37 = vor.u32 1.1754944e-38, %v1643_v24 }
 0x156   :  { %v1405_v21 = vsel %vm1402_vm5, %v1404_v53, %v1400_v49  ;;  %v936_v25 = vand.u32 2147483647, %v3523_v28  ;;  %v938_v16 = vand.u32 2147483648, %v3523_v28  ;;  %v1992_v42 = vmul.f32 -1.442695, %v3540_v59 }
 0x157   :  { %1891 = vst.msk [vmem:[%s4152_s4 + $0x64] sm:$0xf] %vm1865_vm7, %v1826_v44  ;;  %v1778_v58 = vmul.f32 %v1405_v21, %v3374_v6  ;;  %v1634_v30 = vsub.f32 1.0, %v1633_v55  ;;  %v2008_v48 = vmul.f32 -1.442695, %v3543_v26  ;;  %v400_v38 = vmul.f32 %v3132_v7, %v252_v14 }
 0x158   :  { %v2198_v63 = vpop.eup %2197  ;;  %2199 = vpow2.f32 %v1992_v42  ;;  %v2024_v57 = vmul.f32 -1.442695, %v3546_v15  ;;  %v416_v39 = vmul.f32 %v3132_v7, %v292_v31  ;;  %v432_v0 = vmul.f32 %v3132_v7, %v332_v46 }
 0x159   :  { %v1842_v20 = vpack.c.bf16 %v1778_v58, %v1778_v58  ;;  %v1635_v45 = vmul.f32 %v2196_v32, %v1634_v30  ;;  %vm1638_vm11 = vweird.f32 %v2196_v32  ;;  %v928_v50 = vmul.f32 %v2198_v63, %v3523_v28 }
 0x15a   :  { %2201 = vpow2.f32 %v2008_v48  ;;  %v3568_v6 = vadd.f32 %v3097_v60, %v400_v38  ;;  %v3571_v56 = vadd.f32 %v3097_v60, %v416_v39  ;;  %v3574_v33 = vadd.f32 %v3097_v60, %v432_v0  ;;  %vm1639_vm15 = vmor %vm1637_vm9, %vm1638_vm11 }
 0x15b   :  { %1907 = vst.msk [vmem:[%s4152_s4 + $0xa4] sm:$0xf] %vm1865_vm7, %v1842_v20  ;;  %v1636_v8 = vadd.f32 %v2196_v32, %v1635_v45  ;;  %v929_v51 = vsub.f32 1.0, %v928_v50  ;;  %2203 = vpow2.f32 %v2024_v57  ;;  %v448_v9 = vmul.f32 %v3132_v7, %v372_v27  ;;  %v375_v58 = vpop.f32.mrf.mxu3 }
 0x15c   :  { %vm932_vm6 = vweird.f32 %v3523_v28  ;;  %v1977_v40 = vmul.f32 -1.442695, %v3568_v6  ;;  %v1993_v13 = vmul.f32 -1.442695, %v3571_v56  ;;  %v2009_v41 = vmul.f32 -1.442695, %v3574_v33  ;;  %v335_v28 = vpop.f32.mrf.mxu2 }
 0x15d   :  { %v1640_v62 = vsel %vm1639_vm15, %v2196_v32, %v1636_v8  ;;  %v930_v3 = vmul.f32 %v2198_v63, %v929_v51  ;;  %vm933_vm12 = vweird.f32 %v2198_v63  ;;  %v401_v54 = vmul.f32 %v3132_v7, %v255_v4 }
 0x15e   :  { %v2200_v19 = vpop.eup %2199  ;;  %v1645_v35 = vsel %vm3549_vm10, %v1644_v37, %v1640_v62  ;;  %2205 = vpow2.f32 %v1977_v40  ;;  %v3591_v29 = vadd.f32 %v3097_v60, %v448_v9  ;;  %v417_v12 = vmul.f32 %v3132_v7, %v295_v61  ;;  %vm934_vm13 = vmor %vm932_vm6, %vm933_vm12 }
 0x15f   :  { %v1794_v34 = vmul.f32 %v1645_v35, %v3381_v10  ;;  %v931_v23 = vadd.f32 %v2198_v63, %v930_v3  ;;  %v3595_v1 = vadd.f32 1.0, %v2200_v19  ;;  %2207 = vpow2.f32 %v1993_v13 }
 0x160   :  { %v2202_v24 = vpop.eup %2201  ;;  %vm937_vm14 = vcmp.eq.f32.partialorder %v936_v25, 8.507059e+37  ;;  %v939_v18 = vor.u32 1.1754944e-38, %v938_v16  ;;  %2209 = vpow2.f32 %v2009_v41  ;;  %v3601_v52 = vadd.f32 %v3097_v60, %v401_v54 }
 0x161   :  { %v2204_v14 = vpop.eup %2203  ;;  %v1858_v43 = vpack.c.bf16 %v1794_v34, %v1794_v34  ;;  %v935_v2 = vsel %vm934_vm13, %v2198_v63, %v931_v23  ;;  %2211 = vrcp.f32 %v3595_v1  ;;  %v3603_v5 = vadd.f32 1.0, %v2202_v24 }
 0x162   :  { %v940_v10 = vsel %vm937_vm14, %v939_v18, %v935_v2  ;;  %v2025_v31 = vmul.f32 -1.442695, %v3591_v29  ;;  %v3607_v17 = vadd.f32 %v3097_v60, %v417_v12  ;;  %v3614_v22 = vadd.f32 1.0, %v2204_v14  ;;  %v3754_v14 = vld [vmem:[%s4151_s3] ss:$0 sm:$0xff] }
 0x163   :  { %1923 = vst.msk [vmem:[%s4152_s4 + $0xe4] sm:$0xf] %vm1865_vm7, %v1858_v43  ;;  %v1747_v47 = vmul.f32 %v940_v10, %v3408_v11  ;;  %v1176_v32 = vand.u32 2147483647, %v3595_v1  ;;  %v1178_v44 = vand.u32 2147483648, %v3595_v1  ;;  %2213 = vrcp.f32 %v3603_v5 }
 0x164   :  { %v2206_v53 = vpop.eup %2205  ;;  %2215 = vrcp.f32 %v3614_v22  ;;  %v3621_v55 = vmul.f32 %v3132_v7, %v335_v28  ;;  %v1978_v11 = vmul.f32 -1.442695, %v3601_v52  ;;  %v3627_v46 = vmul.f32 -1.442695, %v3607_v17 }
 0x165   :  { %v2208_v49 = vpop.eup %2207  ;;  %v1811_v60 = vpack.c.bf16 %v1747_v47, %v1747_v47  ;;  %v3623_v37 = vadd.f32 1.0, %v2206_v53  ;;  %2217 = vpow2.f32 %v2025_v31  ;;  %vm1172_vm0 = vweird.f32 %v3595_v1 }
 0x166   :  { %v2210_v36 = vpop.eup %2209  ;;  %v1416_v7 = vand.u32 2147483647, %v3603_v5  ;;  %v1418_v25 = vand.u32 2147483648, %v3603_v5  ;;  %v3636_v16 = vadd.f32 1.0, %v2208_v49  ;;  %vm3639_vm1 = vcmp.eq.f32.partialorder %v1176_v32, 8.507059e+37 }
 0x167   :  { %v2212_v21 = vpop.eup %2211  ;;  %1876 = vst.msk [vmem:[%s4152_s4 + $0x28] sm:$0xf] %vm1865_vm7, %v1811_v60  ;;  %v1179_v30 = vor.u32 1.1754944e-38, %v1178_v44  ;;  %v1656_v48 = vand.u32 2147483647, %v3614_v22  ;;  %vm1412_vm2 = vweird.f32 %v3603_v5  ;;  %v1658_v38 = vand.u32 2147483648, %v3614_v22 }
 0x168   :  { %v1168_v42 = vmul.f32 %v2212_v21, %v3595_v1  ;;  %2219 = vrcp.f32 %v3623_v37  ;;  %v3647_v63 = vadd.f32 1.0, %v2210_v36  ;;  %vm1652_vm3 = vweird.f32 %v3614_v22 }
 0x169   :  { %v2214_v57 = vpop.eup %2213  ;;  %v953_v0 = vand.u32 2147483648, %v3623_v37  ;;  %2221 = vrcp.f32 %v3636_v16  ;;  %vm1173_vm4 = vweird.f32 %v2212_v21  ;;  %vm3653_vm5 = vcmp.eq.f32.partialorder %v1416_v7, 8.507059e+37 }
 0x16a   :  { %v1169_v39 = vsub.f32 1.0, %v1168_v42  ;;  %v2216_v27 = vpop.eup %2215  ;;  %v1408_v20 = vmul.f32 %v2214_v57, %v3603_v5  ;;  %v1419_v50 = vor.u32 1.1754944e-38, %v1418_v25  ;;  %vm3658_vm8 = vcmp.eq.f32.partialorder %v1656_v48, 8.507059e+37  ;;  %vm1174_vm11 = vmor %vm1172_vm0, %vm1173_vm4 }
 0x16b   :  { %v2218_v4 = vpop.eup %2217  ;;  %v1648_v51 = vmul.f32 %v2216_v27, %v3614_v22  ;;  %v951_v61 = vand.u32 2147483647, %v3623_v37  ;;  %v1659_v13 = vor.u32 1.1754944e-38, %v1658_v38  ;;  %v1191_v41 = vand.u32 2147483647, %v3636_v16 }
 0x16c   :  { %v1170_v8 = vmul.f32 %v2212_v21, %v1169_v39  ;;  %v1409_v40 = vsub.f32 1.0, %v1408_v20  ;;  %2223 = vrcp.f32 %v3647_v63  ;;  %vm1413_vm9 = vweird.f32 %v2214_v57 }
 0x16d   :  { %v1649_v3 = vsub.f32 1.0, %v1648_v51  ;;  %vm947_vm10 = vweird.f32 %v3623_v37  ;;  %v954_v54 = vor.u32 1.1754944e-38, %v953_v0  ;;  %vm1653_vm15 = vweird.f32 %v2216_v27  ;;  %vm1414_vm14 = vmor %vm1412_vm2, %vm1413_vm9 }
 0x16e   :  { %v1171_v62 = vadd.f32 %v2212_v21, %v1170_v8  ;;  %v2220_v19 = vpop.eup %2219  ;;  %v1410_v35 = vmul.f32 %v2214_v57, %v1409_v40  ;;  %vm1187_vm6 = vweird.f32 %v3636_v16  ;;  %v3670_v12 = vadd.f32 1.0, %v2218_v4  ;;  %v257_v4 = vpop.f32.mrf.mxu0 }
 0x16f   :  { %2225 = vpow2.f32 %v1978_v11  ;;  %v2222_v34 = vpop.eup %2221  ;;  %v1650_v24 = vmul.f32 %v2216_v27, %v1649_v3  ;;  %v943_v18 = vmul.f32 %v2220_v19, %v3623_v37  ;;  %vm3673_vm12 = vcmp.eq.f32.partialorder %v951_v61, 8.507059e+37 }
 0x170   :  { %v1175_v23 = vsel %vm1174_vm11, %v2212_v21, %v1171_v62  ;;  %v1193_v43 = vand.u32 2147483648, %v3636_v16  ;;  %v1411_v2 = vadd.f32 %v2214_v57, %v1410_v35  ;;  %v1183_v10 = vmul.f32 %v2222_v34, %v3636_v16 }
 0x171   :  { %v1180_v1 = vsel %vm3639_vm1, %v1179_v30, %v1175_v23  ;;  %vm3681_vm13 = vcmp.eq.f32.partialorder %v1191_v41, 8.507059e+37  ;;  %v1431_v28 = vand.u32 2147483647, %v3647_v63  ;;  %v1651_v53 = vadd.f32 %v2216_v27, %v1650_v24  ;;  %vm1654_vm1 = vmor %vm1652_vm3, %vm1653_vm15  ;;  %v337_v23 = vpop.f32.mrf.mxu2 }
 0x172   :  { %v1763_v47 = vmul.f32 %v1180_v1, %v3540_v59  ;;  %v944_v32 = vsub.f32 1.0, %v943_v18  ;;  %vm948_vm0 = vweird.f32 %v2220_v19  ;;  %v2224_v44 = vpop.eup %2223  ;;  %v1415_v49 = vsel %vm1414_vm14, %v2214_v57, %v1411_v2  ;;  %v3769_v1 = vld [vmem:[%s4150_s2] ss:$0 sm:$0xff] }
 0x173   :  { %v1184_v60 = vsub.f32 1.0, %v1183_v10  ;;  %vm1188_vm4 = vweird.f32 %v2222_v34  ;;  %vm1427_vm11 = vweird.f32 %v3647_v63  ;;  %2227 = vrcp.f32 %v3670_v12  ;;  %vm949_vm2 = vmor %vm947_vm10, %vm948_vm0 }
 0x174   :  { %v1827_v59 = vpack.c.bf16 %v1763_v47, %v1763_v47  ;;  %v1420_v5 = vsel %vm3653_vm5, %v1419_v50, %v1415_v49  ;;  %v1655_v36 = vsel %vm1654_vm1, %v2216_v27, %v1651_v53  ;;  %v945_v11 = vmul.f32 %v2220_v19, %v944_v32  ;;  %vm1189_vm5 = vmor %vm1187_vm6, %vm1188_vm4 }
 0x175   :  { %v2226_v21 = vpop.eup %2225  ;;  %v1779_v7 = vmul.f32 %v1420_v5, %v3543_v26  ;;  %v1660_v25 = vsel %vm3658_vm8, %v1659_v13, %v1655_v36  ;;  %v1185_v22 = vmul.f32 %v2222_v34, %v1184_v60  ;;  %v1423_v42 = vmul.f32 %v2224_v44, %v3647_v63 }
 0x176   :  { %1892 = vst.msk [vmem:[%s4152_s4 + $0x68] sm:$0xf] %vm1865_vm7, %v1827_v59  ;;  %v1795_v30 = vmul.f32 %v1660_v25, %v3546_v15  ;;  %v946_v48 = vadd.f32 %v2220_v19, %v945_v11  ;;  %v1194_v38 = vor.u32 1.1754944e-38, %v1193_v43  ;;  %v1433_v57 = vand.u32 2147483648, %v3647_v63  ;;  %v260_v11 = vpop.f32.mrf.mxu0 }
 0x177   :  { %v1843_v39 = vpack.c.bf16 %v1779_v7, %v1779_v7  ;;  %v1186_v26 = vadd.f32 %v2222_v34, %v1185_v22  ;;  %v1424_v0 = vsub.f32 1.0, %v1423_v42  ;;  %vm3710_vm3 = vcmp.eq.f32.partialorder %v1431_v28, 8.507059e+37 }
 0x178   :  { %v1859_v20 = vpack.c.bf16 %v1795_v30, %v1795_v30  ;;  %v950_v45 = vsel %vm949_vm2, %v2220_v19, %v946_v48  ;;  %v1671_v15 = vand.u32 2147483647, %v3670_v12  ;;  %v3718_v50 = vadd.f32 1.0, %v2226_v21 }
 0x179   :  { %v2228_v8 = vpop.eup %2227  ;;  %1908 = vst.msk [vmem:[%s4152_s4 + $0xa8] sm:$0xf] %vm1865_vm7, %v1843_v39  ;;  %v955_v37 = vsel %vm3673_vm12, %v954_v54, %v950_v45  ;;  %v1190_v51 = vsel %vm1189_vm5, %v2222_v34, %v1186_v26  ;;  %v1425_v9 = vmul.f32 %v2224_v44, %v1424_v0  ;;  %vm1428_vm8 = vweird.f32 %v2224_v44 }
 0x17a   :  { %1924 = vst.msk [vmem:[%s4152_s4 + $0xe8] sm:$0xf] %vm1865_vm7, %v1859_v20  ;;  %v1748_v16 = vmul.f32 %v955_v37, %v3568_v6  ;;  %v1195_v61 = vsel %vm3681_vm13, %v1194_v38, %v1190_v51  ;;  %v1663_v40 = vmul.f32 %v2228_v8, %v3670_v12  ;;  %v1673_v13 = vand.u32 2147483648, %v3670_v12  ;;  %vm1429_vm9 = vmor %vm1427_vm11, %vm1428_vm8 }
 0x17b   :  { %v1764_v41 = vmul.f32 %v1195_v61, %v3571_v56  ;;  %v1426_v62 = vadd.f32 %v2224_v44, %v1425_v9  ;;  %v1434_v3 = vor.u32 1.1754944e-38, %v1433_v57  ;;  %2229 = vrcp.f32 %v3718_v50  ;;  %v297_v56 = vpop.f32.mrf.mxu1 }
 0x17c   :  { %v1812_v54 = vpack.c.bf16 %v1748_v16, %v1748_v16  ;;  %v1664_v19 = vsub.f32 1.0, %v1663_v40  ;;  %vm1667_vm10 = vweird.f32 %v3670_v12  ;;  %vm3740_vm15 = vcmp.eq.f32.partialorder %v1671_v15, 8.507059e+37 }
 0x17d   :  { %v1828_v35 = vpack.c.bf16 %v1764_v41, %v1764_v41  ;;  %v1430_v34 = vsel %vm1429_vm9, %v2224_v44, %v1426_v62  ;;  %vm1668_vm6 = vweird.f32 %v2228_v8  ;;  %2231 = vpow2.f32 %v3627_v46 }
 0x17e   :  { %1877 = vst.msk [vmem:[%s4152_s4 + $0x2c] sm:$0xf] %vm1865_vm7, %v1812_v54  ;;  %v1435_v63 = vsel %vm3710_vm3, %v1434_v3, %v1430_v34  ;;  %v1665_v24 = vmul.f32 %v2228_v8, %v1664_v19  ;;  %v1674_v18 = vor.u32 1.1754944e-38, %v1673_v13  ;;  %v3758_v46 = vadd.f32 %v3754_v14, %v3621_v55  ;;  %v377_v55 = vpop.f32.mrf.mxu3  ;;  %vm1669_vm13 = vmor %vm1667_vm10, %vm1668_vm6 }
 0x17f   :  { %1893 = vst.msk [vmem:[%s4152_s4 + $0x6c] sm:$0xf] %vm1865_vm7, %v1828_v35  ;;  %v1780_v43 = vmul.f32 %v1435_v63, %v3574_v33  ;;  %vm962_vm12 = vweird.f32 %v3718_v50  ;;  %v449_v2 = vmul.f32 %v3769_v1, %v375_v58  ;;  %v402_v10 = vmul.f32 %v3769_v1, %v257_v4 }
 0x180   :  { %v1666_v31 = vadd.f32 %v2228_v8, %v1665_v24  ;;  %v2010_v28 = vmul.f32 -1.442695, %v3758_v46  ;;  %v418_v47 = vmul.f32 %v3769_v1, %v297_v56  ;;  %v434_v53 = vmul.f32 %v3769_v1, %v337_v23 }
 0x181   :  { %v2230_v33 = vpop.eup %2229  ;;  %v1844_v32 = vpack.c.bf16 %v1780_v43, %v1780_v43  ;;  %v966_v44 = vand.u32 2147483647, %v3718_v50  ;;  %v3781_v49 = vadd.f32 %v3754_v14, %v449_v2  ;;  %v3784_v60 = vadd.f32 %v3754_v14, %v402_v10 }
 0x182   :  { %v1670_v59 = vsel %vm1669_vm13, %v2228_v8, %v1666_v31  ;;  %v958_v5 = vmul.f32 %v2230_v33, %v3718_v50  ;;  %2233 = vpow2.f32 %v2010_v28  ;;  %v450_v36 = vmul.f32 %v3769_v1, %v377_v55 }
 0x183   :  { %v2232_v21 = vpop.eup %2231  ;;  %1909 = vst.msk [vmem:[%s4152_s4 + $0xac] sm:$0xf] %vm1865_vm7, %v1844_v32  ;;  %v1675_v12 = vsel %vm3740_vm15, %v1674_v18, %v1670_v59  ;;  %v2026_v7 = vmul.f32 -1.442695, %v3781_v49  ;;  %v1979_v25 = vmul.f32 -1.442695, %v3784_v60  ;;  %v3797_v22 = vadd.f32 %v3754_v14, %v418_v47  ;;  %v300_v51 = vpop.f32.mrf.mxu1 }
 0x184   :  { %v1796_v42 = vmul.f32 %v1675_v12, %v3591_v29  ;;  %v959_v58 = vsub.f32 1.0, %v958_v5  ;;  %v3800_v30 = vadd.f32 1.0, %v2232_v21  ;;  %v3803_v48 = vadd.f32 %v3754_v14, %v434_v53  ;;  %v340_v53 = vpop.f32.mrf.mxu2 }
 0x185   :  { %v968_v38 = vand.u32 2147483648, %v3718_v50  ;;  %2235 = vpow2.f32 %v2026_v7  ;;  %v1995_v57 = vmul.f32 -1.442695, %v3797_v22  ;;  %v403_v39 = vmul.f32 %v3769_v1, %v260_v11 }
 0x186   :  { %v1860_v26 = vpack.c.bf16 %v1796_v42, %v1796_v42  ;;  %v960_v0 = vmul.f32 %v2230_v33, %v959_v58  ;;  %vm963_vm14 = vweird.f32 %v2230_v33  ;;  %2237 = vrcp.f32 %v3800_v30 }
 0x187   :  { %2239 = vpow2.f32 %v1979_v25  ;;  %v2011_v29 = vmul.f32 -1.442695, %v3803_v48  ;;  %v3811_v27 = vadd.f32 %v3754_v14, %v450_v36  ;;  %vm964_vm0 = vmor %vm962_vm12, %vm963_vm14  ;;  %v969_v15 = vor.u32 1.1754944e-38, %v968_v38  ;;  %v262_v38 = vpop.f32.mrf.mxu0 }
 0x188   :  { %v2234_v20 = vpop.eup %2233  ;;  %1925 = vst.msk [vmem:[%s4152_s4 + $0xec] sm:$0xf] %vm1865_vm7, %v1860_v26  ;;  %v961_v45 = vadd.f32 %v2230_v33, %v960_v0  ;;  %2241 = vpow2.f32 %v1995_v57  ;;  %v1206_v4 = vand.u32 2147483647, %v3800_v30  ;;  %v3823_v37 = vadd.f32 %v3754_v14, %v403_v39 }
 0x189   :  { %v3820_v8 = vadd.f32 1.0, %v2234_v20  ;;  %vm967_vm1 = vcmp.eq.f32.partialorder %v966_v44, 8.507059e+37  ;;  %2243 = vpow2.f32 %v2011_v29  ;;  %v1208_v40 = vand.u32 2147483648, %v3800_v30 }
 0x18a   :  { %v965_v9 = vsel %vm964_vm0, %v2230_v33, %v961_v45  ;;  %v2027_v50 = vmul.f32 -1.442695, %v3811_v27  ;;  %v419_v3 = vmul.f32 %v3769_v1, %v300_v51  ;;  %vm1202_vm4 = vweird.f32 %v3800_v30 }
 0x18b   :  { %v2236_v16 = vpop.eup %2235  ;;  %v970_v61 = vsel %vm967_vm1, %v969_v15, %v965_v9  ;;  %2245 = vrcp.f32 %v3820_v8  ;;  %vm3834_vm11 = vcmp.eq.f32.partialorder %v1206_v4, 8.507059e+37  ;;  %v1980_v35 = vmul.f32 -1.442695, %v3823_v37 }
 0x18c   :  { %v2238_v13 = vpop.eup %2237  ;;  %v1749_v41 = vmul.f32 %v970_v61, %v3601_v52  ;;  %v3829_v62 = vadd.f32 1.0, %v2236_v16  ;;  %v1446_v23 = vand.u32 2147483647, %v3820_v8  ;;  %v1448_v52 = vand.u32 2147483648, %v3820_v8 }
 0x18d   :  { %v2240_v54 = vpop.eup %2239  ;;  %v1198_v19 = vmul.f32 %v2238_v13, %v3800_v30  ;;  %v1209_v24 = vor.u32 1.1754944e-38, %v1208_v40  ;;  %vm1203_vm2 = vweird.f32 %v2238_v13  ;;  %vm1442_vm3 = vweird.f32 %v3820_v8 }
 0x18e   :  { %v2242_v34 = vpop.eup %2241  ;;  %v1813_v56 = vpack.c.bf16 %v1749_v41, %v1749_v41  ;;  %2247 = vrcp.f32 %v3829_v62  ;;  %v3842_v18 = vadd.f32 1.0, %v2240_v54  ;;  %v3852_v10 = vadd.f32 %v3754_v14, %v419_v3  ;;  %vm1204_vm9 = vmor %vm1202_vm4, %vm1203_vm2 }
 0x18f   :  { %v1199_v63 = vsub.f32 1.0, %v1198_v19  ;;  %2249 = vpow2.f32 %v2027_v50  ;;  %v2244_v43 = vpop.eup %2243  ;;  %v3849_v2 = vadd.f32 1.0, %v2242_v34  ;;  %v1686_v28 = vand.u32 2147483647, %v3829_v62 }
 0x190   :  { %1878 = vst.msk [vmem:[%s4152_s4 + $0x30] sm:$0xf] %vm1865_vm7, %v1813_v56  ;;  %v1688_v47 = vand.u32 2147483648, %v3829_v62  ;;  %2251 = vrcp.f32 %v3842_v18  ;;  %vm3858_vm5 = vcmp.eq.f32.partialorder %v1446_v23, 8.507059e+37  ;;  %v1449_v44 = vor.u32 1.1754944e-38, %v1448_v52 }
 0x191   :  { %v2246_v55 = vpop.eup %2245  ;;  %v1200_v31 = vmul.f32 %v2238_v13, %v1199_v63  ;;  %2253 = vpow2.f32 %v1980_v35  ;;  %vm1682_vm8 = vweird.f32 %v3829_v62  ;;  %v3864_v5 = vadd.f32 1.0, %v2244_v43 }
 0x192   :  { %v1438_v33 = vmul.f32 %v2246_v55, %v3820_v8  ;;  %2255 = vrcp.f32 %v3849_v2  ;;  %v981_v21 = vand.u32 2147483647, %v3842_v18  ;;  %v3871_v12 = vmul.f32 -1.442695, %v3852_v10 }
 0x193   :  { %v1201_v59 = vadd.f32 %v2238_v13, %v1200_v31  ;;  %v3874_v7 = vmul.f32 %v3769_v1, %v340_v53  ;;  %vm3877_vm10 = vcmp.eq.f32.partialorder %v1686_v28, 8.507059e+37  ;;  %v1689_v57 = vor.u32 1.1754944e-38, %v1688_v47 }
 0x194   :  { %v2248_v36 = vpop.eup %2247  ;;  %v1439_v11 = vsub.f32 1.0, %v1438_v33  ;;  %vm1443_vm15 = vweird.f32 %v2246_v55  ;;  %v983_v26 = vand.u32 2147483648, %v3842_v18  ;;  %vm977_vm6 = vweird.f32 %v3842_v18 }
 0x195   :  { %v2250_v25 = vpop.eup %2249  ;;  %v1205_v42 = vsel %vm1204_vm9, %v2238_v13, %v1201_v59  ;;  %v1678_v58 = vmul.f32 %v2248_v36, %v3829_v62  ;;  %2257 = vrcp.f32 %v3864_v5  ;;  %vm3888_vm12 = vcmp.eq.f32.partialorder %v981_v21, 8.507059e+37  ;;  %vm1444_vm14 = vmor %vm1442_vm3, %vm1443_vm15 }
 0x196   :  { %v1210_v30 = vsel %vm3834_vm11, %v1209_v24, %v1205_v42  ;;  %v1440_v39 = vmul.f32 %v2246_v55, %v1439_v11  ;;  %v2252_v0 = vpop.eup %2251  ;;  %vm1217_vm13 = vweird.f32 %v3849_v2  ;;  %v1221_v9 = vand.u32 2147483647, %v3849_v2 }
 0x197   :  { %v1765_v29 = vmul.f32 %v1210_v30, %v3607_v17  ;;  %v1679_v20 = vsub.f32 1.0, %v1678_v58  ;;  %v2254_v45 = vpop.eup %2253  ;;  %v973_v4 = vmul.f32 %v2252_v0, %v3842_v18  ;;  %v1223_v16 = vand.u32 2147483648, %v3849_v2 }
 0x198   :  { %v1441_v15 = vadd.f32 %v2246_v55, %v1440_v39  ;;  %v2256_v17 = vpop.eup %2255  ;;  %vm1683_vm0 = vweird.f32 %v2248_v36  ;;  %v3898_v50 = vadd.f32 1.0, %v2250_v25  ;;  %v984_v3 = vor.u32 1.1754944e-38, %v983_v26 }
 0x199   :  { %v1829_v61 = vpack.c.bf16 %v1765_v29, %v1765_v29  ;;  %v1680_v40 = vmul.f32 %v2248_v36, %v1679_v20  ;;  %v974_v41 = vsub.f32 1.0, %v973_v4  ;;  %v1213_v54 = vmul.f32 %v2256_v17, %v3849_v2  ;;  %vm1684_vm4 = vmor %vm1682_vm8, %vm1683_vm0 }
 0x19a   :  { %v1445_v13 = vsel %vm1444_vm14, %v2246_v55, %v1441_v15  ;;  %vm978_vm1 = vweird.f32 %v2252_v0  ;;  %v1461_v8 = vand.u32 2147483647, %v3864_v5  ;;  %2259 = vrcp.f32 %v3898_v50  ;;  %v302_v15 = vpop.f32.mrf.mxu1 }
 0x19b   :  { %1894 = vst.msk [vmem:[%s4152_s4 + $0x70] sm:$0xf] %vm1865_vm7, %v1829_v61  ;;  %v1450_v19 = vsel %vm3858_vm5, %v1449_v44, %v1445_v13  ;;  %v1681_v6 = vadd.f32 %v2248_v36, %v1680_v40  ;;  %v975_v34 = vmul.f32 %v2252_v0, %v974_v41  ;;  %v1214_v56 = vsub.f32 1.0, %v1213_v54  ;;  %v2258_v23 = vpop.eup %2257  ;;  %vm979_vm3 = vmor %vm977_vm6, %vm978_vm1 }
 0x19c   :  { %v1781_v35 = vmul.f32 %v1450_v19, %v3758_v46  ;;  %vm1218_vm11 = vweird.f32 %v2256_v17  ;;  %vm3912_vm2 = vcmp.eq.f32.partialorder %v1221_v9, 8.507059e+37  ;;  %v1224_v24 = vor.u32 1.1754944e-38, %v1223_v16 }
 0x19d   :  { %v1685_v52 = vsel %vm1684_vm4, %v2248_v36, %v1681_v6  ;;  %v976_v46 = vadd.f32 %v2252_v0, %v975_v34  ;;  %v1215_v31 = vmul.f32 %v2256_v17, %v1214_v56  ;;  %v1453_v28 = vmul.f32 %v2258_v23, %v3864_v5  ;;  %vm1219_vm9 = vmor %vm1217_vm13, %vm1218_vm11  ;;  %v380_v36 = vpop.f32.mrf.mxu3 }
 0x19e   :  { %v1845_v43 = vpack.c.bf16 %v1781_v35, %v1781_v35  ;;  %v1690_v55 = vsel %vm3877_vm10, %v1689_v57, %v1685_v52  ;;  %vm1457_vm5 = vweird.f32 %v3864_v5  ;;  %v1463_v47 = vand.u32 2147483648, %v3864_v5 }
 0x19f   :  { %v1797_v62 = vmul.f32 %v1690_v55, %v3781_v49  ;;  %v980_v53 = vsel %vm979_vm3, %v2252_v0, %v976_v46  ;;  %v1216_v33 = vadd.f32 %v2256_v17, %v1215_v31  ;;  %vm3929_vm8 = vcmp.eq.f32.partialorder %v1461_v8, 8.507059e+37 }
 0x1a0   :  { %1910 = vst.msk [vmem:[%s4152_s4 + $0xb0] sm:$0xf] %vm1865_vm7, %v1845_v43  ;;  %v3933_v49 = vadd.f32 1.0, %v2254_v45  ;;  %v985_v44 = vsel %vm3888_vm12, %v984_v3, %v980_v53  ;;  %v1454_v59 = vsub.f32 1.0, %v1453_v28  ;;  %2261 = vpow2.f32 %v3871_v12  ;;  %v2260_v11 = vpop.eup %2259 }
 0x1a1   :  { %v1861_v18 = vpack.c.bf16 %v1797_v62, %v1797_v62  ;;  %v1750_v21 = vmul.f32 %v985_v44, %v3784_v60  ;;  %v1220_v25 = vsel %vm1219_vm9, %v2256_v17, %v1216_v33  ;;  %v1701_v42 = vand.u32 2147483647, %v3898_v50 }
 0x1a2   :  { %2263 = vrcp.f32 %v3933_v49  ;;  %v1225_v2 = vsel %vm3912_vm2, %v1224_v24, %v1220_v25  ;;  %v1455_v58 = vmul.f32 %v2258_v23, %v1454_v59  ;;  %vm1458_vm10 = vweird.f32 %v2258_v23 }
 0x1a3   :  { %1926 = vst.msk [vmem:[%s4152_s4 + $0xf0] sm:$0xf] %vm1865_vm7, %v1861_v18  ;;  %v1693_v12 = vmul.f32 %v2260_v11, %v3898_v50  ;;  %v1814_v57 = vpack.c.bf16 %v1750_v21, %v1750_v21  ;;  %v1766_v60 = vmul.f32 %v1225_v2, %v3797_v22  ;;  %v1464_v30 = vor.u32 1.1754944e-38, %v1463_v47  ;;  %vm1459_vm6 = vmor %vm1457_vm5, %vm1458_vm10 }
 0x1a4   :  { %vm1697_vm15 = vweird.f32 %v3898_v50  ;;  %v1456_v39 = vadd.f32 %v2258_v23, %v1455_v58  ;;  %v3955_v0 = vadd.f32 %v3754_v14, %v3874_v7  ;;  %v451_v29 = vmul.f32 %v3769_v1, %v380_v36 }
 0x1a5   :  { %v1694_v26 = vsub.f32 1.0, %v1693_v12  ;;  %1879 = vst.msk [vmem:[%s4152_s4 + $0x34] sm:$0xf] %vm1865_vm7, %v1814_v57  ;;  %v1830_v20 = vpack.c.bf16 %v1766_v60, %v1766_v60  ;;  %vm3964_vm12 = vcmp.eq.f32.partialorder %v1701_v42, 8.507059e+37  ;;  %v1703_v45 = vand.u32 2147483648, %v3898_v50 }
 0x1a6   :  { %v404_v7 = vmul.f32 %v3769_v1, %v262_v38  ;;  %v2262_v4 = vpop.eup %2261  ;;  %v1460_v51 = vsel %vm1459_vm6, %v2258_v23, %v1456_v39  ;;  %vm1698_vm13 = vweird.f32 %v2260_v11  ;;  %v2012_v16 = vmul.f32 -1.442695, %v3955_v0  ;;  %v382_v23 = vpop.f32.mrf.mxu3 }
 0x1a7   :  { %v1695_v9 = vmul.f32 %v2260_v11, %v1694_v26  ;;  %1895 = vst.msk [vmem:[%s4152_s4 + $0x74] sm:$0xf] %vm1865_vm7, %v1830_v20  ;;  %v1465_v5 = vsel %vm3929_vm8, %v1464_v30, %v1460_v51  ;;  %v3977_v61 = vadd.f32 1.0, %v2262_v4  ;;  %v3980_v40 = vadd.f32 %v3754_v14, %v451_v29  ;;  %vm1699_vm14 = vmor %vm1697_vm15, %vm1698_vm13 }
 0x1a8   :  { %v2264_v17 = vpop.eup %2263  ;;  %v3983_v13 = vadd.f32 %v3754_v14, %v404_v7  ;;  %v1782_v41 = vmul.f32 %v1465_v5, %v3803_v48  ;;  %v420_v19 = vmul.f32 %v3769_v1, %v302_v15  ;;  %v1704_v6 = vor.u32 1.1754944e-38, %v1703_v45  ;;  %v342_v48 = vpop.f32.mrf.mxu2 }
 0x1a9   :  { %v1696_v3 = vadd.f32 %v2260_v11, %v1695_v9  ;;  %v988_v54 = vmul.f32 %v2264_v17, %v3933_v49  ;;  %vm992_vm0 = vweird.f32 %v3933_v49  ;;  %v996_v8 = vand.u32 2147483647, %v3933_v49 }
 0x1aa   :  { %2265 = vrcp.f32 %v3977_v61  ;;  %v1846_v35 = vpack.c.bf16 %v1782_v41, %v1782_v41  ;;  %vm993_vm1 = vweird.f32 %v2264_v17  ;;  %v998_v50 = vand.u32 2147483648, %v3933_v49 }
 0x1ab   :  { %v1700_v34 = vsel %vm1699_vm14, %v2260_v11, %v1696_v3  ;;  %v989_v56 = vsub.f32 1.0, %v988_v54  ;;  %2267 = vpow2.f32 %v2012_v16  ;;  %v2028_v63 = vmul.f32 -1.442695, %v3980_v40  ;;  %vm994_vm4 = vmor %vm992_vm0, %vm993_vm1 }
 0x1ac   :  { %v1705_v52 = vsel %vm3964_vm12, %v1704_v6, %v1700_v34  ;;  %1911 = vst.msk [vmem:[%s4152_s4 + $0xb4] sm:$0xf] %vm1865_vm7, %v1846_v35  ;;  %v1981_v55 = vmul.f32 -1.442695, %v3983_v13  ;;  %v4004_v46 = vadd.f32 %v3754_v14, %v420_v19  ;;  %v436_v31 = vmul.f32 %v3769_v1, %v342_v48 }
 0x1ad   :  { %v1798_v24 = vmul.f32 %v1705_v52, %v3811_v27  ;;  %v990_v43 = vmul.f32 %v2264_v17, %v989_v56  ;;  %2269 = vpow2.f32 %v2028_v63  ;;  %v452_v62 = vmul.f32 %v3769_v1, %v382_v23 }
 0x1ae   :  { %2271 = vpow2.f32 %v1981_v55  ;;  %v1997_v53 = vmul.f32 -1.442695, %v4004_v46  ;;  %v999_v27 = vor.u32 1.1754944e-38, %v998_v50  ;;  %v4013_v32 = vadd.f32 %v3754_v14, %v436_v31 }
 0x1af   :  { %v1862_v28 = vpack.c.bf16 %v1798_v24, %v1798_v24  ;;  %v991_v47 = vadd.f32 %v2264_v17, %v990_v43  ;;  %v4016_v18 = vadd.f32 %v3754_v14, %v452_v62  ;;  %vm997_vm11 = vcmp.eq.f32.partialorder %v996_v8, 8.507059e+37 }
 0x1b0   :  { %v2266_v33 = vpop.eup %2265  ;;  %2273 = vpow2.f32 %v1997_v53  ;;  %v2013_v11 = vmul.f32 -1.442695, %v4013_v32  ;;  %vm1232_vm2 = vweird.f32 %v3977_v61  ;;  %v1236_v2 = vand.u32 2147483647, %v3977_v61 }
 0x1b1   :  { %v2268_v44 = vpop.eup %2267  ;;  %1927 = vst.msk [vmem:[%s4152_s4 + $0xf4] sm:$0xf] %vm1865_vm7, %v1862_v28  ;;  %v995_v1 = vsel %vm994_vm4, %v2264_v17, %v991_v47  ;;  %v1228_v59 = vmul.f32 %v2266_v33, %v3977_v61  ;;  %v2029_v21 = vmul.f32 -1.442695, %v4016_v18  ;;  %vm1233_vm3 = vweird.f32 %v2266_v33 }
 0x1b2   :  { %v1000_v49 = vsel %vm997_vm11, %v999_v27, %v995_v1  ;;  %v4023_v36 = vadd.f32 1.0, %v2268_v44  ;;  %v1238_v58 = vand.u32 2147483648, %v3977_v61  ;;  %vm1234_vm5 = vmor %vm1232_vm2, %vm1233_vm3  ;;  %vm1237_vm8 = vcmp.eq.f32.partialorder %v1236_v2, 8.507059e+37 }
 0x1b3   :  { %v1751_v14 = vmul.f32 %v1000_v49, %v3823_v37  ;;  %v1229_v25 = vsub.f32 1.0, %v1228_v59  ;;  %v2270_v42 = vpop.eup %2269 }
 0x1b4   :  { %2275 = vrcp.f32 %v4023_v36  ;;  %v2272_v12 = vpop.eup %2271  ;;  %v4032_v60 = vadd.f32 1.0, %v2270_v42  ;;  %v1476_v26 = vand.u32 2147483647, %v4023_v36  ;;  %v1478_v29 = vand.u32 2147483648, %v4023_v36 }
 0x1b5   :  { %v1815_v38 = vpack.c.bf16 %v1751_v14, %v1751_v14  ;;  %v1230_v57 = vmul.f32 %v2266_v33, %v1229_v25  ;;  %2277 = vpow2.f32 %v2013_v11  ;;  %v4034_v30 = vadd.f32 1.0, %v2272_v12 }
 0x1b6   :  { %2279 = vpow2.f32 %v2029_v21  ;;  %v2274_v37 = vpop.eup %2273  ;;  %v1239_v20 = vor.u32 1.1754944e-38, %v1238_v58  ;;  %vm1472_vm9 = vweird.f32 %v4023_v36  ;;  %vm4052_vm10 = vcmp.eq.f32.partialorder %v1476_v26, 8.507059e+37 }
 0x1b7   :  { %1880 = vst.msk [vmem:[%s4152_s4 + $0x38] sm:$0xf] %vm1865_vm7, %v1815_v38  ;;  %v1231_v39 = vadd.f32 %v2266_v33, %v1230_v57  ;;  %2281 = vrcp.f32 %v4032_v60  ;;  %v4047_v45 = vadd.f32 1.0, %v2274_v37  ;;  %v1479_v17 = vor.u32 1.1754944e-38, %v1478_v29 }
 0x1b8   :  { %2283 = vrcp.f32 %v4034_v30  ;;  %vm1712_vm15 = vweird.f32 %v4032_v60  ;;  %v1716_v61 = vand.u32 2147483647, %v4032_v60  ;;  %v1718_v41 = vand.u32 2147483648, %v4032_v60 }
 0x1b9   :  { %v1235_v22 = vsel %vm1234_vm5, %v2266_v33, %v1231_v39  ;;  %2285 = vrcp.f32 %v4047_v45  ;;  %vm1007_vm6 = vweird.f32 %v4034_v30  ;;  %v1011_v34 = vand.u32 2147483647, %v4034_v30 }
 0x1ba   :  { %v2276_v7 = vpop.eup %2275  ;;  %v1240_v15 = vsel %vm1237_vm8, %v1239_v20, %v1235_v22  ;;  %v1013_v56 = vand.u32 2147483648, %v4034_v30  ;;  %vm4074_vm13 = vcmp.eq.f32.partialorder %v1716_v61, 8.507059e+37  ;;  %v1719_v63 = vor.u32 1.1754944e-38, %v1718_v41 }
 0x1bb   :  { %v2278_v4 = vpop.eup %2277  ;;  %v1767_v51 = vmul.f32 %v1240_v15, %v3852_v10  ;;  %v1468_v9 = vmul.f32 %v2276_v7, %v4023_v36  ;;  %vm1473_vm12 = vweird.f32 %v2276_v7  ;;  %v1251_v24 = vand.u32 2147483647, %v4047_v45 }
 0x1bc   :  { %v2280_v5 = vpop.eup %2279  ;;  %v4060_v10 = vadd.f32 1.0, %v2278_v4  ;;  %v1253_v31 = vand.u32 2147483648, %v4047_v45  ;;  %vm1474_vm14 = vmor %vm1472_vm9, %vm1473_vm12  ;;  %vm4083_vm1 = vcmp.eq.f32.partialorder %v1011_v34, 8.507059e+37  ;;  %v1014_v53 = vor.u32 1.1754944e-38, %v1013_v56 }
 0x1bd   :  { %v2282_v3 = vpop.eup %2281  ;;  %v1831_v54 = vpack.c.bf16 %v1767_v51, %v1767_v51  ;;  %v1469_v19 = vsub.f32 1.0, %v1468_v9  ;;  %v4062_v6 = vadd.f32 1.0, %v2280_v5  ;;  %vm1247_vm11 = vweird.f32 %v4047_v45 }
 0x1be   :  { %v2284_v8 = vpop.eup %2283  ;;  %v1708_v35 = vmul.f32 %v2282_v3, %v4032_v60  ;;  %2287 = vrcp.f32 %v4060_v10  ;;  %vm1713_vm0 = vweird.f32 %v2282_v3  ;;  %vm4091_vm2 = vcmp.eq.f32.partialorder %v1251_v24, 8.507059e+37 }
 0x1bf   :  { %1896 = vst.msk [vmem:[%s4152_s4 + $0x78] sm:$0xf] %vm1865_vm7, %v1831_v54  ;;  %v1470_v48 = vmul.f32 %v2276_v7, %v1469_v19  ;;  %v1003_v23 = vmul.f32 %v2284_v8, %v4034_v30  ;;  %2289 = vrcp.f32 %v4062_v6  ;;  %v2286_v62 = vpop.eup %2285  ;;  %vm1008_vm4 = vweird.f32 %v2284_v8  ;;  %vm1714_vm3 = vmor %vm1712_vm15, %vm1713_vm0 }
 0x1c0   :  { %v1709_v52 = vsub.f32 1.0, %v1708_v35  ;;  %v1243_v44 = vmul.f32 %v2286_v62, %v4047_v45  ;;  %v1254_v25 = vor.u32 1.1754944e-38, %v1253_v31  ;;  %vm1009_vm5 = vmor %vm1007_vm6, %vm1008_vm4  ;;  %vm1248_vm8 = vweird.f32 %v2286_v62 }
 0x1c1   :  { %v1471_v43 = vadd.f32 %v2276_v7, %v1470_v48  ;;  %v1004_v55 = vsub.f32 1.0, %v1003_v23  ;;  %vm1487_vm9 = vweird.f32 %v4060_v10  ;;  %v1491_v20 = vand.u32 2147483647, %v4060_v10 }
 0x1c2   :  { %v1710_v28 = vmul.f32 %v2282_v3, %v1709_v52  ;;  %v1244_v14 = vsub.f32 1.0, %v1243_v44  ;;  %v1493_v22 = vand.u32 2147483648, %v4060_v10  ;;  %v1731_v9 = vand.u32 2147483647, %v4062_v6 }
 0x1c3   :  { %v1475_v33 = vsel %vm1474_vm14, %v2276_v7, %v1471_v43  ;;  %v1005_v27 = vmul.f32 %v2284_v8, %v1004_v55  ;;  %v1733_v16 = vand.u32 2147483648, %v4062_v6  ;;  %vm1727_vm14 = vweird.f32 %v4062_v6 }
 0x1c4   :  { %v1480_v1 = vsel %vm4052_vm10, %v1479_v17, %v1475_v33  ;;  %v1711_v59 = vadd.f32 %v2282_v3, %v1710_v28  ;;  %v2288_v36 = vpop.eup %2287  ;;  %v1245_v57 = vmul.f32 %v2286_v62, %v1244_v14  ;;  %vm1249_vm10 = vmor %vm1247_vm11, %vm1248_vm8  ;;  %v1494_v61 = vor.u32 1.1754944e-38, %v1493_v22 }
 0x1c5   :  { %v1783_v11 = vmul.f32 %v1480_v1, %v3955_v0  ;;  %v1006_v21 = vadd.f32 %v2284_v8, %v1005_v27  ;;  %v1483_v2 = vmul.f32 %v2288_v36, %v4060_v10  ;;  %v2290_v58 = vpop.eup %2289  ;;  %vm1488_vm15 = vweird.f32 %v2288_v36 }
 0x1c6   :  { %v1715_v42 = vsel %vm1714_vm3, %v2282_v3, %v1711_v59  ;;  %v1723_v30 = vmul.f32 %v2290_v58, %v4062_v6  ;;  %v1246_v29 = vadd.f32 %v2286_v62, %v1245_v57  ;;  %vm1728_vm6 = vweird.f32 %v2290_v58  ;;  %vm1489_vm12 = vmor %vm1487_vm9, %vm1488_vm15 }
 0x1c7   :  { %v1847_v12 = vpack.c.bf16 %v1783_v11, %v1783_v11  ;;  %v1720_v0 = vsel %vm4074_vm13, %v1719_v63, %v1715_v42  ;;  %v1010_v38 = vsel %vm1009_vm5, %v2284_v8, %v1006_v21  ;;  %v1484_v39 = vsub.f32 1.0, %v1483_v2  ;;  %vm1729_vm0 = vmor %vm1727_vm14, %vm1728_vm6 }
 0x1c8   :  { %v1799_v60 = vmul.f32 %v1720_v0, %v3980_v40  ;;  %v1015_v37 = vsel %vm4083_vm1, %v1014_v53, %v1010_v38  ;;  %v1724_v15 = vsub.f32 1.0, %v1723_v30  ;;  %v1250_v51 = vsel %vm1249_vm10, %v2286_v62, %v1246_v29 }
 0x1c9   :  { %1912 = vst.msk [vmem:[%s4152_s4 + $0xb8] sm:$0xf] %vm1865_vm7, %v1847_v12  ;;  %v1752_v26 = vmul.f32 %v1015_v37, %v3983_v13  ;;  %v1485_v40 = vmul.f32 %v2288_v36, %v1484_v39  ;;  %v1255_v13 = vsel %vm4091_vm2, %v1254_v25, %v1250_v51  ;;  %vm1492_vm13 = vcmp.eq.f32.partialorder %v1491_v20, 8.507059e+37 }
 0x1ca   :  { %v1863_v7 = vpack.c.bf16 %v1799_v60, %v1799_v60  ;;  %v1725_v45 = vmul.f32 %v2290_v58, %v1724_v15  ;;  %v1768_v5 = vmul.f32 %v1255_v13, %v4004_v46  ;;  %v1734_v8 = vor.u32 1.1754944e-38, %v1733_v16 }
 0x1cb   :  { %v1816_v4 = vpack.c.bf16 %v1752_v26, %v1752_v26  ;;  %v1486_v17 = vadd.f32 %v2288_v36, %v1485_v40  ;;  %vm1732_vm1 = vcmp.eq.f32.partialorder %v1731_v9, 8.507059e+37 }
 0x1cc   :  { %1928 = vst.msk [vmem:[%s4152_s4 + $0xf8] sm:$0xf] %vm1865_vm7, %v1863_v7  ;;  %v1726_v3 = vadd.f32 %v2290_v58, %v1725_v45  ;;  %v1832_v54 = vpack.c.bf16 %v1768_v5, %v1768_v5 }
 0x1cd   :  { %1881 = vst.msk [vmem:[%s4152_s4 + $0x3c] sm:$0xf] %vm1865_vm7, %v1816_v4  ;;  %v1490_v41 = vsel %vm1489_vm12, %v2288_v36, %v1486_v17 }
 0x1ce   :  { %v1495_v19 = vsel %vm1492_vm13, %v1494_v61, %v1490_v41  ;;  %v1730_v34 = vsel %vm1729_vm0, %v2290_v58, %v1726_v3  ;;  %1897 = vst.msk [vmem:[%s4152_s4 + $0x7c] sm:$0xf] %vm1865_vm7, %v1832_v54 }
 0x1cf   :  { %v1784_v35 = vmul.f32 %v1495_v19, %v4013_v32  ;;  %v1735_v46 = vsel %vm1732_vm1, %v1734_v8, %v1730_v34 }
 0x1d0   :  { %v1800_v56 = vmul.f32 %v1735_v46, %v4016_v18 }
 0x1d1   :  { %v1848_v10 = vpack.c.bf16 %v1784_v35, %v1784_v35 }
 0x1d2   :  { %v1864_v6 = vpack.c.bf16 %v1800_v56, %v1800_v56 }
 0x1d3   :  { %1913 = vst.msk [vmem:[%s4152_s4 + $0xbc] sm:$0xf] %vm1865_vm7, %v1848_v10 }
 0x1d4   :  { %1929 = vst.msk [vmem:[%s4152_s4 + $0xfc] sm:$0xf] %vm1865_vm7, %v1864_v6 }

</bundles_post_ra>
